<compile_context>
chip_gen: v5e
topology: v5e:2x2
jax: 0.10.0
libtpu: 0.0.40
codegen_flags: <defaults>
</compile_context>

<pallas_src>
import functools

import jax
import jax.numpy as jnp
from jax.experimental import pallas as pl
from jax.experimental.pallas import tpu as pltpu


def _peg_kernel(x_ref, up_ref, dn_ref, w_ref, b_ref, o_ref, xp_ref, *, th, W, C, K):
    # x_ref : (1, th, W, C)        current H-tile (also the residual)
    # up_ref: (1, p, W, C)         p rows directly above the tile (clamped at top)
    # dn_ref: (1, p, W, C)         p rows directly below the tile (clamped at bottom)
    # w_ref : (K, K, C)            depthwise taps (one KxK filter per channel), resident
    # b_ref : (1, C)               bias, resident
    # o_ref : (1, th, W, C)        output tile
    # xp_ref: (1, th+2p, W+2p, C)  VMEM scratch: zero-padded tile assembled in-kernel
    p = K // 2
    h = pl.program_id(1)
    n_h = pl.num_programs(1)

    x = x_ref[...]

    # Halo rows; rows falling outside the image are zero (conv zero-padding).
    up = up_ref[...] * (h > 0).astype(x.dtype)
    dn = dn_ref[...] * (h < n_h - 1).astype(x.dtype)

    # Assemble the zero-padded tile in VMEM (no host pad, no extra HBM pass).
    zcol = jnp.zeros((1, th + 2 * p, p, C), dtype=x.dtype)
    xp_ref[:, :, 0:p, :] = zcol                       # left zero columns
    xp_ref[:, :, p + W:p + W + p, :] = zcol           # right zero columns
    xp_ref[:, 0:p, p:p + W, :] = up                   # top halo rows
    xp_ref[:, p:p + th, p:p + W, :] = x               # interior
    xp_ref[:, p + th:p + th + p, p:p + W, :] = dn     # bottom halo rows

    # Residual + bias initialise the accumulator (saves a zeros pass and the
    # separate bias add). Accumulate the K*K shifted-window taps in f32; the
    # per-tap multiply stays in the input dtype (bf16 on v6e/v7x stays bf16).
    acc = x.astype(jnp.float32) + b_ref[0, :].astype(jnp.float32)
    for kh in range(K):
        for kw in range(K):
            win = xp_ref[:, kh:kh + th, kw:kw + W, :]
            tap = w_ref[kh, kw, :]
            acc = acc + (win * tap).astype(jnp.float32)
    o_ref[...] = acc.astype(o_ref.dtype)


def _pick_tile_h(H, W, C, itemsize, p, tile_h=None):
    if tile_h is not None:
        if H % tile_h != 0 or tile_h % p != 0:
            raise ValueError("tile_h must divide H and be a multiple of kernel_size // 2")
        return int(tile_h)
    # ~2 MiB per (th, W, C) block: in + out + padded scratch, double-buffered,
    # stays well inside v7x's 64 MiB VMEM while amortizing per-grid-step overhead.
    target_bytes = 2 * 1024 * 1024
    row_bytes = W * C * itemsize
    valid = [d for d in range(1, H + 1) if H % d == 0 and d % p == 0]
    if not valid:
        raise ValueError(f"H={H} must be a multiple of kernel_size//2={p}")
    fitting = [d for d in valid if d * row_bytes <= target_bytes]
    return max(fitting) if fitting else min(valid)


def peg_forward_nhwc(x_nhwc, weight_kkc, bias_c, kernel_size=3, tile_h=None,
                     vmem_limit_bytes=64 * 1024 * 1024):
    """PEG forward in NHWC (preferred: C on the lane dim, no transposes).

    x_nhwc: (B, H, W, C); weight_kkc: (K, K, C) depthwise taps; bias_c: (C,).
    Returns x + depthwise_conv(x, KxK, stride 1, pad K//2) + bias.
    """
    B, H, W, C = x_nhwc.shape
    K = int(kernel_size)
    if K % 2 != 1 or K < 3:
        raise ValueError("kernel_size must be odd and >= 3")
    p = K // 2
    itemsize = jnp.dtype(x_nhwc.dtype).itemsize
    th = _pick_tile_h(H, W, C, itemsize, p, tile_h)
    n_h = H // th
    hb = th // p          # halo-blocks (of p rows) per tile
    n_hb = H // p         # total halo-blocks along H

    bias_2d = bias_c.reshape(1, C)
    kernel = functools.partial(_peg_kernel, th=th, W=W, C=C, K=K)

    tile_map = lambda b, h: (b, h, 0, 0)
    # Halo rows come from the SAME un-padded x array via tiny p-row blocks with
    # clamped block indices (clamped reads are zeroed in-kernel at the image edge).
    up_map = lambda b, h: (b, jnp.maximum(h * hb - 1, 0), 0, 0)
    dn_map = lambda b, h: (b, jnp.minimum((h + 1) * hb, n_hb - 1), 0, 0)

    out = pl.pallas_call(
        kernel,
        out_shape=jax.ShapeDtypeStruct((B, H, W, C), x_nhwc.dtype),
        grid_spec=pltpu.PrefetchScalarGridSpec(
            num_scalar_prefetch=0,
            grid=(B, n_h),
            in_specs=[
                pl.BlockSpec((1, th, W, C), tile_map),
                pl.BlockSpec((1, p, W, C), up_map),
                pl.BlockSpec((1, p, W, C), dn_map),
                pl.BlockSpec((K, K, C), lambda b, h: (0, 0, 0)),   # weights stay resident
                pl.BlockSpec((1, C), lambda b, h: (0, 0)),         # bias stays resident
            ],
            out_specs=pl.BlockSpec((1, th, W, C), tile_map),
            scratch_shapes=[
                pltpu.VMEM((1, th + 2 * p, W + 2 * p, C), x_nhwc.dtype),
            ],
        ),
        compiler_params=pltpu.CompilerParams(
            dimension_semantics=("parallel", "parallel"),
            vmem_limit_bytes=vmem_limit_bytes,
        ),
    )(x_nhwc, x_nhwc, x_nhwc, weight_kkc, bias_2d)
    return out


def peg_forward_nchw(x_nchw, weight_oikk, bias_c, kernel_size=3, tile_h=None):
    """PyTorch-layout drop-in: x (B, C, H, W), weight (C, 1, K, K), bias (C,).

    Note: the boundary transposes cost extra HBM passes; prefer peg_forward_nhwc
    and keep the surrounding model NHWC when possible.
    """
    x_nhwc = jnp.transpose(x_nchw, (0, 2, 3, 1))
    weight_kkc = jnp.transpose(weight_oikk[:, 0, :, :], (1, 2, 0))   # (K, K, C)
    out_nhwc = peg_forward_nhwc(x_nhwc, weight_kkc, bias_c, kernel_size, tile_h)
    return jnp.transpose(out_nhwc, (0, 3, 1, 2))


# ----------------------------- references ---------------------------------- #

def _reference_nhwc(x_nhwc, weight_kkc, bias_c, kernel_size=3):
    B, H, W, C = x_nhwc.shape
    p = kernel_size // 2
    w = weight_kkc.reshape(kernel_size, kernel_size, 1, C).astype(jnp.float32)
    conv = jax.lax.conv_general_dilated(
        x_nhwc.astype(jnp.float32), w, window_strides=(1, 1),
        padding=((p, p), (p, p)), feature_group_count=C,
        dimension_numbers=("NHWC", "HWIO", "NHWC"))
    conv = conv + bias_c.reshape(1, 1, 1, C).astype(jnp.float32)
    return (x_nhwc.astype(jnp.float32) + conv).astype(x_nhwc.dtype)


def _reference_nchw(x_nchw, weight_oikk, bias_c, kernel_size=3):
    C = x_nchw.shape[1]
    p = kernel_size // 2
    conv = jax.lax.conv_general_dilated(
        x_nchw.astype(jnp.float32), weight_oikk.astype(jnp.float32),
        window_strides=(1, 1), padding=((p, p), (p, p)),
        feature_group_count=C, dimension_numbers=("NCHW", "OIHW", "NCHW"))
    conv = conv + bias_c.reshape(1, C, 1, 1).astype(jnp.float32)
    return (x_nchw.astype(jnp.float32) + conv).astype(x_nchw.dtype)


if __name__ == "__main__":
    key = jax.random.PRNGKey(0)
    kx, kw_, kb, kx2 = jax.random.split(key, 4)

    K = 3
    fan_in = K * K                      # nn.Conv2d default init bound
    bound = 1.0 / (fan_in ** 0.5)

    # --- Config 1: lane-dense channels (C multiple of 128), NHWC fast path ---
    B, H, W, C = 2, 16, 16, 128
    x = jax.random.normal(kx, (B, H, W, C), dtype=jnp.float32)
    w_kkc = jax.random.uniform(kw_, (K, K, C), jnp.float32, -bound, bound)
    b = jax.random.uniform(kb, (C,), jnp.float32, -bound, bound)

    ref = _reference_nhwc(x, w_kkc, b, K)

    out = jax.block_until_ready(peg_forward_nhwc(x, w_kkc, b, K))
    assert out.shape == x.shape
    assert jnp.allclose(out, ref, atol=1e-5, rtol=1e-5), "NHWC single-tile mismatch"

    # Same input, forced multi-tile grid (exercises the H-halo path).
    out_tiled = jax.block_until_ready(peg_forward_nhwc(x, w_kkc, b, K, tile_h=4))
    assert jnp.allclose(out_tiled, ref, atol=1e-5, rtol=1e-5), "NHWC tiled mismatch"

    # --- Config 2: PyTorch NCHW drop-in at the module's nominal tiny shape ---
    Bc, Cc, Hc, Wc = 2, 4, 16, 16
    x_nchw = jax.random.normal(kx2, (Bc, Cc, Hc, Wc), dtype=jnp.float32)
    kw2, kb2 = jax.random.split(kw_, 2)
    w_oikk = jax.random.uniform(kw2, (Cc, 1, K, K), jnp.float32, -bound, bound)
    b2 = jax.random.uniform(kb2, (Cc,), jnp.float32, -bound, bound)

    out_nchw = jax.block_until_ready(peg_forward_nchw(x_nchw, w_oikk, b2, K))
    ref_nchw = _reference_nchw(x_nchw, w_oikk, b2, K)
    assert out_nchw.shape == (Bc, Cc, Hc, Wc)
    assert jnp.allclose(out_nchw, ref_nchw, atol=1e-5, rtol=1e-5), "NCHW mismatch"

    print("KERNEL_OK")
</pallas_src>

<mosaic_0001>
module attributes {stable_mosaic.version = 11 : i64} {
  func.func @_peg_kernel(%arg0: i32, %arg1: i32, %arg2: memref<1x16x16x128xf32, #tpu.memory_space<vmem>>, %arg3: memref<1x1x16x128xf32, #tpu.memory_space<vmem>>, %arg4: memref<1x1x16x128xf32, #tpu.memory_space<vmem>>, %arg5: memref<3x3x128xf32, #tpu.memory_space<vmem>>, %arg6: memref<1x128xf32, #tpu.memory_space<vmem>>, %arg7: memref<1x16x16x128xf32, #tpu.memory_space<vmem>>, %arg8: memref<1x18x18x128xf32, #tpu.memory_space<vmem>>) attributes {dimension_semantics = [#tpu.dimension_semantics<parallel>, #tpu.dimension_semantics<parallel>], iteration_bounds = array<i64: 2, 1>, scalar_prefetch = 0 : i64, scratch_operands = 1 : i64, tpu.core_type = #tpu.core_type<tc>, window_params = [{transform_indices = @transform_0, window_bounds = array<i64: 1, 16, 16, 128>}, {transform_indices = @transform_1, window_bounds = array<i64: 1, 1, 16, 128>}, {transform_indices = @transform_2, window_bounds = array<i64: 1, 1, 16, 128>}, {pipeline_mode = #tpu.pipeline_mode<synchronous>, transform_indices = @transform_3, window_bounds = array<i64: 3, 3, 128>}, {pipeline_mode = #tpu.pipeline_mode<synchronous>, transform_indices = @transform_4, window_bounds = array<i64: 1, 128>}, {transform_indices = @transform_5, window_bounds = array<i64: 1, 16, 16, 128>}]} {
    %c0 = arith.constant 0 : index
    %c0_0 = arith.constant 0 : index
    %c0_1 = arith.constant 0 : index
    %c0_2 = arith.constant 0 : index
    %0 = vector.load %arg2[%c0, %c0_0, %c0_1, %c0_2] : memref<1x16x16x128xf32, #tpu.memory_space<vmem>>, vector<1x16x16x128xf32>
    %c0_3 = arith.constant 0 : index
    %c0_4 = arith.constant 0 : index
    %c0_5 = arith.constant 0 : index
    %c0_6 = arith.constant 0 : index
    %1 = vector.load %arg3[%c0_3, %c0_4, %c0_5, %c0_6] : memref<1x1x16x128xf32, #tpu.memory_space<vmem>>, vector<1x1x16x128xf32>
    %c0_i32 = arith.constant 0 : i32
    %2 = arith.cmpi sgt, %arg1, %c0_i32 : i32
    %3 = arith.extui %2 : i1 to i32
    %4 = arith.sitofp %3 : i32 to f32
    %5 = vector.broadcast %4 : f32 to vector<1x1x16x128xf32>
    %6 = arith.mulf %1, %5 : vector<1x1x16x128xf32>
    %c0_7 = arith.constant 0 : index
    %c0_8 = arith.constant 0 : index
    %c0_9 = arith.constant 0 : index
    %c0_10 = arith.constant 0 : index
    %7 = vector.load %arg4[%c0_7, %c0_8, %c0_9, %c0_10] : memref<1x1x16x128xf32, #tpu.memory_space<vmem>>, vector<1x1x16x128xf32>
    %c0_i32_11 = arith.constant 0 : i32
    %8 = arith.cmpi slt, %arg1, %c0_i32_11 : i32
    %9 = arith.extui %8 : i1 to i32
    %10 = arith.sitofp %9 : i32 to f32
    %11 = vector.broadcast %10 : f32 to vector<1x1x16x128xf32>
    %12 = arith.mulf %7, %11 : vector<1x1x16x128xf32>
    %cst = arith.constant 0.000000e+00 : f32
    %13 = vector.broadcast %cst : f32 to vector<1x18x1x128xf32>
    %c0_12 = arith.constant 0 : index
    %c0_13 = arith.constant 0 : index
    %c0_14 = arith.constant 0 : index
    %c0_15 = arith.constant 0 : index
    %14 = vector.load %arg8[%c0_12, %c0_13, %c0_14, %c0_15] : memref<1x18x18x128xf32, #tpu.memory_space<vmem>>, vector<1x18x1x128xf32>
    tpu.vector_store %arg8[%c0_12, %c0_13, %c0_14, %c0_15], %13 {strides = array<i32>} : memref<1x18x18x128xf32, #tpu.memory_space<vmem>>, vector<1x18x1x128xf32>,
    %c0_16 = arith.constant 0 : index
    %c0_17 = arith.constant 0 : index
    %c17 = arith.constant 17 : index
    %c0_18 = arith.constant 0 : index
    %15 = vector.load %arg8[%c0_16, %c0_17, %c17, %c0_18] : memref<1x18x18x128xf32, #tpu.memory_space<vmem>>, vector<1x18x1x128xf32>
    tpu.vector_store %arg8[%c0_16, %c0_17, %c17, %c0_18], %13 {strides = array<i32>} : memref<1x18x18x128xf32, #tpu.memory_space<vmem>>, vector<1x18x1x128xf32>,
    %c0_19 = arith.constant 0 : index
    %c0_20 = arith.constant 0 : index
    %c1 = arith.constant 1 : index
    %c0_21 = arith.constant 0 : index
    %16 = vector.load %arg8[%c0_19, %c0_20, %c1, %c0_21] : memref<1x18x18x128xf32, #tpu.memory_space<vmem>>, vector<1x1x16x128xf32>
    tpu.vector_store %arg8[%c0_19, %c0_20, %c1, %c0_21], %6 {strides = array<i32>} : memref<1x18x18x128xf32, #tpu.memory_space<vmem>>, vector<1x1x16x128xf32>,
    %c0_22 = arith.constant 0 : index
    %c1_23 = arith.constant 1 : index
    %c1_24 = arith.constant 1 : index
    %c0_25 = arith.constant 0 : index
    %17 = vector.load %arg8[%c0_22, %c1_23, %c1_24, %c0_25] : memref<1x18x18x128xf32, #tpu.memory_space<vmem>>, vector<1x16x16x128xf32>
    tpu.vector_store %arg8[%c0_22, %c1_23, %c1_24, %c0_25], %0 {strides = array<i32>} : memref<1x18x18x128xf32, #tpu.memory_space<vmem>>, vector<1x16x16x128xf32>,
    %c0_26 = arith.constant 0 : index
    %c17_27 = arith.constant 17 : index
    %c1_28 = arith.constant 1 : index
    %c0_29 = arith.constant 0 : index
    %18 = vector.load %arg8[%c0_26, %c17_27, %c1_28, %c0_29] : memref<1x18x18x128xf32, #tpu.memory_space<vmem>>, vector<1x1x16x128xf32>
    tpu.vector_store %arg8[%c0_26, %c17_27, %c1_28, %c0_29], %12 {strides = array<i32>} : memref<1x18x18x128xf32, #tpu.memory_space<vmem>>, vector<1x1x16x128xf32>,
    %c0_30 = arith.constant 0 : index
    %c0_31 = arith.constant 0 : index
    %19 = vector.load %arg6[%c0_30, %c0_31] : memref<1x128xf32, #tpu.memory_space<vmem>>, vector<1x128xf32>
    %20 = vector.shape_cast %19 : vector<1x128xf32> to vector<128xf32>
    %21 = vector.shape_cast %20 : vector<128xf32> to vector<1x1x1x128xf32>
    %22 = vector.broadcast %21 : vector<1x1x1x128xf32> to vector<1x16x16x128xf32>
    %23 = arith.addf %0, %22 : vector<1x16x16x128xf32>
    %c0_32 = arith.constant 0 : index
    %c0_33 = arith.constant 0 : index
    %c0_34 = arith.constant 0 : index
    %c0_35 = arith.constant 0 : index
    %24 = vector.load %arg8[%c0_32, %c0_33, %c0_34, %c0_35] : memref<1x18x18x128xf32, #tpu.memory_space<vmem>>, vector<1x16x16x128xf32>
    %c0_36 = arith.constant 0 : index
    %c0_37 = arith.constant 0 : index
    %c0_38 = arith.constant 0 : index
    %25 = vector.load %arg5[%c0_36, %c0_37, %c0_38] : memref<3x3x128xf32, #tpu.memory_space<vmem>>, vector<1x1x128xf32>
    %26 = vector.shape_cast %25 : vector<1x1x128xf32> to vector<128xf32>
    %27 = vector.shape_cast %26 : vector<128xf32> to vector<1x1x1x128xf32>
    %28 = vector.broadcast %27 : vector<1x1x1x128xf32> to vector<1x16x16x128xf32>
    %29 = arith.mulf %24, %28 : vector<1x16x16x128xf32>
    %30 = arith.addf %23, %29 : vector<1x16x16x128xf32>
    %c0_39 = arith.constant 0 : index
    %c0_40 = arith.constant 0 : index
    %c1_41 = arith.constant 1 : index
    %c0_42 = arith.constant 0 : index
    %31 = vector.load %arg8[%c0_39, %c0_40, %c1_41, %c0_42] : memref<1x18x18x128xf32, #tpu.memory_space<vmem>>, vector<1x16x16x128xf32>
    %c0_43 = arith.constant 0 : index
    %c1_44 = arith.constant 1 : index
    %c0_45 = arith.constant 0 : index
    %32 = vector.load %arg5[%c0_43, %c1_44, %c0_45] : memref<3x3x128xf32, #tpu.memory_space<vmem>>, vector<1x1x128xf32>
    %33 = vector.shape_cast %32 : vector<1x1x128xf32> to vector<128xf32>
    %34 = vector.shape_cast %33 : vector<128xf32> to vector<1x1x1x128xf32>
    %35 = vector.broadcast %34 : vector<1x1x1x128xf32> to vector<1x16x16x128xf32>
    %36 = arith.mulf %31, %35 : vector<1x16x16x128xf32>
    %37 = arith.addf %30, %36 : vector<1x16x16x128xf32>
    %c0_46 = arith.constant 0 : index
    %c0_47 = arith.constant 0 : index
    %c2 = arith.constant 2 : index
    %c0_48 = arith.constant 0 : index
    %38 = vector.load %arg8[%c0_46, %c0_47, %c2, %c0_48] : memref<1x18x18x128xf32, #tpu.memory_space<vmem>>, vector<1x16x16x128xf32>
    %c0_49 = arith.constant 0 : index
    %c2_50 = arith.constant 2 : index
    %c0_51 = arith.constant 0 : index
    %39 = vector.load %arg5[%c0_49, %c2_50, %c0_51] : memref<3x3x128xf32, #tpu.memory_space<vmem>>, vector<1x1x128xf32>
    %40 = vector.shape_cast %39 : vector<1x1x128xf32> to vector<128xf32>
    %41 = vector.shape_cast %40 : vector<128xf32> to vector<1x1x1x128xf32>
    %42 = vector.broadcast %41 : vector<1x1x1x128xf32> to vector<1x16x16x128xf32>
    %43 = arith.mulf %38, %42 : vector<1x16x16x128xf32>
    %44 = arith.addf %37, %43 : vector<1x16x16x128xf32>
    %c0_52 = arith.constant 0 : index
    %c1_53 = arith.constant 1 : index
    %c0_54 = arith.constant 0 : index
    %c0_55 = arith.constant 0 : index
    %45 = vector.load %arg8[%c0_52, %c1_53, %c0_54, %c0_55] : memref<1x18x18x128xf32, #tpu.memory_space<vmem>>, vector<1x16x16x128xf32>
    %c1_56 = arith.constant 1 : index
    %c0_57 = arith.constant 0 : index
    %c0_58 = arith.constant 0 : index
    %46 = vector.load %arg5[%c1_56, %c0_57, %c0_58] : memref<3x3x128xf32, #tpu.memory_space<vmem>>, vector<1x1x128xf32>
    %47 = vector.shape_cast %46 : vector<1x1x128xf32> to vector<128xf32>
    %48 = vector.shape_cast %47 : vector<128xf32> to vector<1x1x1x128xf32>
    %49 = vector.broadcast %48 : vector<1x1x1x128xf32> to vector<1x16x16x128xf32>
    %50 = arith.mulf %45, %49 : vector<1x16x16x128xf32>
    %51 = arith.addf %44, %50 : vector<1x16x16x128xf32>
    %c0_59 = arith.constant 0 : index
    %c1_60 = arith.constant 1 : index
    %c1_61 = arith.constant 1 : index
    %c0_62 = arith.constant 0 : index
    %52 = vector.load %arg8[%c0_59, %c1_60, %c1_61, %c0_62] : memref<1x18x18x128xf32, #tpu.memory_space<vmem>>, vector<1x16x16x128xf32>
    %c1_63 = arith.constant 1 : index
    %c1_64 = arith.constant 1 : index
    %c0_65 = arith.constant 0 : index
    %53 = vector.load %arg5[%c1_63, %c1_64, %c0_65] : memref<3x3x128xf32, #tpu.memory_space<vmem>>, vector<1x1x128xf32>
    %54 = vector.shape_cast %53 : vector<1x1x128xf32> to vector<128xf32>
    %55 = vector.shape_cast %54 : vector<128xf32> to vector<1x1x1x128xf32>
    %56 = vector.broadcast %55 : vector<1x1x1x128xf32> to vector<1x16x16x128xf32>
    %57 = arith.mulf %52, %56 : vector<1x16x16x128xf32>
    %58 = arith.addf %51, %57 : vector<1x16x16x128xf32>
    %c0_66 = arith.constant 0 : index
    %c1_67 = arith.constant 1 : index
    %c2_68 = arith.constant 2 : index
    %c0_69 = arith.constant 0 : index
    %59 = vector.load %arg8[%c0_66, %c1_67, %c2_68, %c0_69] : memref<1x18x18x128xf32, #tpu.memory_space<vmem>>, vector<1x16x16x128xf32>
    %c1_70 = arith.constant 1 : index
    %c2_71 = arith.constant 2 : index
    %c0_72 = arith.constant 0 : index
    %60 = vector.load %arg5[%c1_70, %c2_71, %c0_72] : memref<3x3x128xf32, #tpu.memory_space<vmem>>, vector<1x1x128xf32>
    %61 = vector.shape_cast %60 : vector<1x1x128xf32> to vector<128xf32>
    %62 = vector.shape_cast %61 : vector<128xf32> to vector<1x1x1x128xf32>
    %63 = vector.broadcast %62 : vector<1x1x1x128xf32> to vector<1x16x16x128xf32>
    %64 = arith.mulf %59, %63 : vector<1x16x16x128xf32>
    %65 = arith.addf %58, %64 : vector<1x16x16x128xf32>
    %c0_73 = arith.constant 0 : index
    %c2_74 = arith.constant 2 : index
    %c0_75 = arith.constant 0 : index
    %c0_76 = arith.constant 0 : index
    %66 = vector.load %arg8[%c0_73, %c2_74, %c0_75, %c0_76] : memref<1x18x18x128xf32, #tpu.memory_space<vmem>>, vector<1x16x16x128xf32>
    %c2_77 = arith.constant 2 : index
    %c0_78 = arith.constant 0 : index
    %c0_79 = arith.constant 0 : index
    %67 = vector.load %arg5[%c2_77, %c0_78, %c0_79] : memref<3x3x128xf32, #tpu.memory_space<vmem>>, vector<1x1x128xf32>
    %68 = vector.shape_cast %67 : vector<1x1x128xf32> to vector<128xf32>
    %69 = vector.shape_cast %68 : vector<128xf32> to vector<1x1x1x128xf32>
    %70 = vector.broadcast %69 : vector<1x1x1x128xf32> to vector<1x16x16x128xf32>
    %71 = arith.mulf %66, %70 : vector<1x16x16x128xf32>
    %72 = arith.addf %65, %71 : vector<1x16x16x128xf32>
    %c0_80 = arith.constant 0 : index
    %c2_81 = arith.constant 2 : index
    %c1_82 = arith.constant 1 : index
    %c0_83 = arith.constant 0 : index
    %73 = vector.load %arg8[%c0_80, %c2_81, %c1_82, %c0_83] : memref<1x18x18x128xf32, #tpu.memory_space<vmem>>, vector<1x16x16x128xf32>
    %c2_84 = arith.constant 2 : index
    %c1_85 = arith.constant 1 : index
    %c0_86 = arith.constant 0 : index
    %74 = vector.load %arg5[%c2_84, %c1_85, %c0_86] : memref<3x3x128xf32, #tpu.memory_space<vmem>>, vector<1x1x128xf32>
    %75 = vector.shape_cast %74 : vector<1x1x128xf32> to vector<128xf32>
    %76 = vector.shape_cast %75 : vector<128xf32> to vector<1x1x1x128xf32>
    %77 = vector.broadcast %76 : vector<1x1x1x128xf32> to vector<1x16x16x128xf32>
    %78 = arith.mulf %73, %77 : vector<1x16x16x128xf32>
    %79 = arith.addf %72, %78 : vector<1x16x16x128xf32>
    %c0_87 = arith.constant 0 : index
    %c2_88 = arith.constant 2 : index
    %c2_89 = arith.constant 2 : index
    %c0_90 = arith.constant 0 : index
    %80 = vector.load %arg8[%c0_87, %c2_88, %c2_89, %c0_90] : memref<1x18x18x128xf32, #tpu.memory_space<vmem>>, vector<1x16x16x128xf32>
    %c2_91 = arith.constant 2 : index
    %c2_92 = arith.constant 2 : index
    %c0_93 = arith.constant 0 : index
    %81 = vector.load %arg5[%c2_91, %c2_92, %c0_93] : memref<3x3x128xf32, #tpu.memory_space<vmem>>, vector<1x1x128xf32>
    %82 = vector.shape_cast %81 : vector<1x1x128xf32> to vector<128xf32>
    %83 = vector.shape_cast %82 : vector<128xf32> to vector<1x1x1x128xf32>
    %84 = vector.broadcast %83 : vector<1x1x1x128xf32> to vector<1x16x16x128xf32>
    %85 = arith.mulf %80, %84 : vector<1x16x16x128xf32>
    %86 = arith.addf %79, %85 : vector<1x16x16x128xf32>
    %c0_94 = arith.constant 0 : index
    %c0_95 = arith.constant 0 : index
    %c0_96 = arith.constant 0 : index
    %c0_97 = arith.constant 0 : index
    %87 = vector.load %arg7[%c0_94, %c0_95, %c0_96, %c0_97] : memref<1x16x16x128xf32, #tpu.memory_space<vmem>>, vector<1x16x16x128xf32>
    tpu.vector_store %arg7[%c0_94, %c0_95, %c0_96, %c0_97], %86 {strides = array<i32>} : memref<1x16x16x128xf32, #tpu.memory_space<vmem>>, vector<1x16x16x128xf32>,
    return
  }
  func.func @transform_0(%arg0: i32, %arg1: i32) -> (i32, i32, i32, i32) {
    %c0_i32 = arith.constant 0 : i32
    %c0_i32_0 = arith.constant 0 : i32
    %c0_i32_1 = arith.constant 0 : i32
    return %arg0, %arg1, %c0_i32, %c0_i32_0 : i32, i32, i32, i32
  }
  func.func @transform_1(%arg0: i32, %arg1: i32) -> (i32, i32, i32, i32) {
    %c16_i32 = arith.constant 16 : i32
    %0 = arith.muli %arg1, %c16_i32 : i32
    %c1_i32 = arith.constant 1 : i32
    %1 = arith.subi %0, %c1_i32 : i32
    %c0_i32 = arith.constant 0 : i32
    %2 = arith.maxsi %1, %c0_i32 : i32
    %c0_i32_0 = arith.constant 0 : i32
    %c0_i32_1 = arith.constant 0 : i32
    %c0_i32_2 = arith.constant 0 : i32
    return %arg0, %2, %c0_i32_0, %c0_i32_1 : i32, i32, i32, i32
  }
  func.func @transform_2(%arg0: i32, %arg1: i32) -> (i32, i32, i32, i32) {
    %c1_i32 = arith.constant 1 : i32
    %0 = arith.addi %arg1, %c1_i32 : i32
    %c16_i32 = arith.constant 16 : i32
    %1 = arith.muli %0, %c16_i32 : i32
    %c15_i32 = arith.constant 15 : i32
    %2 = arith.minsi %1, %c15_i32 : i32
    %c0_i32 = arith.constant 0 : i32
    %c0_i32_0 = arith.constant 0 : i32
    %c0_i32_1 = arith.constant 0 : i32
    return %arg0, %2, %c0_i32, %c0_i32_0 : i32, i32, i32, i32
  }
  func.func @transform_3(%arg0: i32, %arg1: i32) -> (i32, i32, i32) {
    %c0_i32 = arith.constant 0 : i32
    %c0_i32_0 = arith.constant 0 : i32
    %c0_i32_1 = arith.constant 0 : i32
    %c0_i32_2 = arith.constant 0 : i32
    return %c0_i32, %c0_i32_0, %c0_i32_1 : i32, i32, i32
  }
  func.func @transform_4(%arg0: i32, %arg1: i32) -> (i32, i32) {
    %c0_i32 = arith.constant 0 : i32
    %c0_i32_0 = arith.constant 0 : i32
    %c0_i32_1 = arith.constant 0 : i32
    return %c0_i32, %c0_i32_0 : i32, i32
  }
  func.func @transform_5(%arg0: i32, %arg1: i32) -> (i32, i32, i32, i32) {
    %c0_i32 = arith.constant 0 : i32
    %c0_i32_0 = arith.constant 0 : i32
    %c0_i32_1 = arith.constant 0 : i32
    return %arg0, %arg1, %c0_i32, %c0_i32_0 : i32, i32, i32, i32
  }
}

</mosaic_0001>

<bundles_post_ra>
// kernel: tpu_custom_call.1
= control target key start
LH: loop header
LB: loop body
LE: loop exit
PB: predicated region body
PF: predicated region fallthrough
CT: control target
= control target key end

     0   :  { %s3386_s0 = inlined_call_operand.hbm [shape: f32[2,16,16,128], index: 0, kind: input, shape index: {}]   ;;  %s3387_s1 = inlined_call_operand.hbm [shape: f32[2,16,16,128], index: 1, kind: input, shape index: {}]   ;;  %s3388_s2 = inlined_call_operand.hbm [shape: f32[2,16,16,128], index: 2, kind: input, shape index: {}]   ;;  %s3389_s3 = inlined_call_operand.hbm [shape: f32[3,3,128], index: 3, kind: input, shape index: {}]   ;;  %s3390_s4 = inlined_call_operand.vmem [shape: f32[1,128], index: 4, kind: input, shape index: {}]   ;;  %s3391_s5 = inlined_call_operand.hbm [shape: f32[2,16,16,128], index: 5, kind: output, shape index: {}]  }
   0x1   :  { %3493 = sst [smem:[#allocation94_spill]] %s3386_s0 }
   0x2   :  { %3494 = sst [smem:[#allocation95_spill]] %s3387_s1 }
   0x3   :  { %3495 = sst [smem:[#allocation96_spill]] %s3389_s3 }
   0x4   :  { %10 = vsyncpa [#allocation4], 0 }
   0x5   :  { %12 = vsyncpa [#allocation4 + $0x1], 0 }
   0x6   :  { %13 = vsyncpa [#allocation7], 0 }
   0x7   :  { %15 = vsyncpa [#allocation7 + $0x1], 0 }
   0x8   :  { %16 = vsyncpa [#allocation10], 0 }
   0x9   :  { %17 = vsyncpa [#allocation5], 0 }
   0xa   :  { %19 = vsyncpa [#allocation5 + $0x1], 0  ;;  %s2032_s18 = smov 0   ;;  %s2034_s19 = smov 0  }
   0xb   :  { %s2036_s20 = smov 0   ;;  %s2038_s21 = smov 0  }
   0xc   :  { %s2040_s22 = smov 0   ;;  %s2042_s23 = smov 0  }
   0xd LB: > { %3496 = sst [smem:[#allocation16_spill]] %s1972_s18  ;;  %s37_s24 = sadd.s32 1, %s1988_s22  ;;  %s1992_s23 = sphi %s2042_s23, %s25_s23   ;;  %s1988_s22 = sphi %s2040_s22, %s3725_s22   ;;  %s1984_s21 = sphi %s2038_s21, %s3724_s21   ;;  %s1980_s20 = sphi %s2036_s20, %s3723_s20   ;;  %s1976_s19 = sphi %s2034_s19, %s3727_s19   ;;  %s1972_s18 = sphi %s2032_s18, %s3726_s18  }
   0xe   : > { %3497 = sst [smem:[#allocation17_spill]] %s1980_s20  ;;  %s46_s25 = sadd.s32 1, %s1980_s20 }
   0xf   : > { %3498 = sst [smem:[#allocation18_spill]] %s1988_s22  ;;  %p39_p0 = scmp.ge.s32.totalorder %s37_s24, 2 }
  0x10   : > { %3499 = sst [smem:[#allocation19_spill]] %s1992_s23  ;;  %p53_p1 = scmp.ne.s32.totalorder %s1980_s20, %s1976_s19 }
  0x11   : > { %p54_p2 = scmp.eq.s32.totalorder %s1992_s23, 0  ;;  %p1648_p3 = scmp.ge.s32.totalorder %s1992_s23, 2 }
  0x12   : > { %s3729_s24 = smov (%p39_p0, %s37_s24), 0  ;;  %p1706_p5 = scmp.lt.s32.totalorder %s1992_s23, 2 }
  0x13   : > { %3500 = sst [smem:[#allocation20_spill]] %s3729_s24  ;;  %p55_p4 = por %p54_p2, %p53_p1 }
  0x14   : > { %s41_s26 = ssub.s32 %s1988_s22, %s3729_s24  ;;  %s2077_s27 = sand.u32 1, %s1980_s20  }
  0x15   : > { %p44_p6 = scmp.eq.s32.totalorder %s41_s26, 0  ;;  %s2080_s28 = sshll.u32 %s1988_s22, 8 }
  0x16   : > { %p2082_p7 = pnand %p1706_p5, %p55_p4  ;;  %s267_s6 = sand.u32 1, %s1992_s23  }
  0x17   : > { %s2087_s30 = scalar_select %p44_p6, %s1980_s20, %s46_s25  }
  0x18   : > { %s1652_s7 = sshll.u32 %s2077_s27, 4  ;;  %s3503_s1 = sld [smem:[#allocation95_spill]] }
  0x19   : > { %3502 = sst [smem:[#allocation21_spill]] %s2087_s30  ;;  %s271_s11 = scalar_lea.vmem [#allocation6], %s1652_s7 }
  0x1a   : > { %s285_s12 = sshll.u32 %s271_s11, 4  ;;  %s2095_s14 = scalar_lea.sflag [#allocation7], %s267_s6  ;;  %s286_s12 = int_to_ptr.vmem [resolvable:$true] %s285_s12 }
  0x1b   : > { %s3392_s15 = smov 128   ;;  %s3394_s16 = smov 8  }
  0x1c   : > { %s2103_s17 = scalar_lea.vmem [#allocation8], %s1652_s7  ;;  %s2107_s26 = sadd.s32 4294967295, %s1992_s23  }
  0x1d   : > { %s1645_s6 = sadd.s32 4294967294, %s1992_s23   ;;  %p59_p8 = scmp.ne.s32.totalorder %s1976_s19, %s1972_s18 }
  0x1e   : > { %s282_s10 = scalar_lea.hbm %s3503_s1, %s2080_s28  ;;  %p60_p9 = scmp.eq.s32.totalorder %s2107_s26, 0 }
  0x1f   : > { %s283_s13 = sshll.u32 %s282_s10, 4  ;;  %p199_p10 = scmp.eq.s32.totalorder %s2107_s26, 1  ;;  %s284_s13 = int_to_ptr.hbm [resolvable:$true] %s283_s13 }
  0x20   : > { %1697 = dma.hbm_to_vmem [thread:$0]  (!%p2082_p7), %s284_s13, 256, %s286_s12, %s2095_s14, %s3392_s15, %s3392_s15, %s3394_s16  }
  0x21   : > { %p205_p11 = scmp.eq.s32.totalorder %s1645_s6, 1  ;;  %p2116_p12 = por %p60_p9, %p59_p8 }
  0x22   : > { %p1646_p13 = scmp.ge.s32.totalorder %s1992_s23, 1  ;;  %p2124_p0 = por %p199_p10, %p53_p1 }
  0x23   : > { %p2128_p2 = por %p205_p11, %p59_p8  ;;  %p212_p4 = scmp.lt.s32.totalorder %s1992_s23, 3 }
  0x24   : > { %s3508_s3 = sld [smem:[#allocation96_spill]]  ;;  %s1996_s6 = smov [#allocation9]  }
  0x25   : > { %s3506_s9 = scalar_select %p2128_p2, 1, 0 }
  0x26   : > { %p2136_p5 = pnand %p1646_p13, %p212_p4  ;;  %s225_s25 = sshll.u32 %s1996_s6, 4  ;;  %s226_s25 = int_to_ptr.vmem [resolvable:$true] %s225_s25 }
  0x27   : > { %3507 = sst [smem:[#allocation22_spill]] %s3506_s9  ;;  %s1649_s15 = sshll.u32 %s2077_s27, 8 }
  0x28   : > { %p1687_p1 = pneg %p2136_p5  ;;  %s3510_s0 = sld [smem:[#allocation94_spill]] }
  0x29   : > { %s1998_s24 = smov 4   ;;  %s246_s6 = scalar_lea.vmem [#allocation3], %s1649_s15 }
  0x2a   : > { %s223_s12 = sshll.u32 %s3508_s3, 4  ;;  %p1688_p6 = pnand %p1687_p1, %p60_p9  ;;  %s224_s12 = int_to_ptr.hbm [resolvable:$true] %s223_s12 }
  0x2b   : > { %s1997_s3 = smov 64   ;;  %s257_s22 = sshll.u32 %s246_s6, 4  ;;  %s258_s22 = int_to_ptr.vmem [resolvable:$true] %s257_s22 }
  0x2c   : > { %1690 = dma.hbm_to_vmem [thread:$0]  (!%p1688_p6), %s224_s12, 192, %s226_s25, [#allocation10], %s1997_s3, %s1997_s3, %s1998_s24  }
  0x2d   : > { %s1672_s30 = sadd.s32 240, %s2080_s28  ;;  %s243_s20 = scalar_lea.sflag [#allocation4], %s2077_s27 }
  0x2e   : > { %s254_s16 = scalar_lea.hbm %s3510_s0, %s2080_s28  ;;  %s3511_s23 = smov 8  }
  0x2f   : > { %s255_s1 = sshll.u32 %s254_s16, 4  ;;  %s3512_s9 = smov 128   ;;  %s256_s1 = int_to_ptr.hbm [resolvable:$true] %s255_s1 }
  0x30   : > { %1694 = dma.hbm_to_vmem [thread:$0]  (!%p2082_p7), %s256_s1, 4096, %s258_s22, %s243_s20, %s3512_s9, %s3512_s9, %s3511_s23  }
  0x31   : > { %s3513_s18 = sshll.u32 %s2103_s17, 4  ;;  %s310_s16 = scalar_lea.hbm %s3388_s2, %s1672_s30  ;;  %s314_s18 = int_to_ptr.vmem [resolvable:$true] %s3513_s18 }
  0x32   : > { %s311_s0 = sshll.u32 %s310_s16, 4  ;;  %325 = sbr.rel (%p2136_p5) target bundleno = 342 (0x156), region = 40  ;;  %s312_s0 = int_to_ptr.hbm [resolvable:$true] %s311_s0 }
  0x33   : > { %1700 = dma.hbm_to_vmem [thread:$0]  (!%p2082_p7), %s312_s0, 256, %s314_s18, %s2095_s14, %s3512_s9, %s3512_s9, %s3511_s23  }
  0x37   : > { %s2170_s3 = sand.u32 1, %s1976_s19  }
  0x38   : > { %s1659_s1 = sshll.u32 %s2170_s3, 8  ;;  %s328_s20 = scalar_lea.sflag [#allocation4], %s2170_s3 }
  0x39   : > { %s2176_s22 = scalar_lea.vmem [#allocation3], %s1659_s1 }
  0x3a   : > { %1955 = dma.done.wait (%p2116_p12), %s328_s20, 4096  }
  0x3b   : > { %1957 = vsyncadd (%p2116_p12), %s328_s20, 4294963200  ;;  %s337_s0 = sand.u32 1, %s2107_s26   ;;  %s1660_s18 = sshll.u32 %s2170_s3, 4 }
  0x3c   : > { %s338_s23 = scalar_lea.sflag [#allocation7], %s337_s0  ;;  %s2184_s24 = scalar_lea.vmem [#allocation6], %s1660_s18 }
  0x3d   : > { %1959 = dma.done.wait (%p2116_p12), %s338_s23, 512  }
  0x3e   : > { %1961 = vsyncadd (%p2116_p12), %s338_s23, 4294966784  ;;  %s2190_s27 = scalar_lea.vmem [#allocation8], %s1660_s18 }
  0x3f   : > { %1963 = dma.done.wait (%p60_p9), [#allocation10], 192  }
  0x40   : > { %1965 = vsyncadd (%p60_p9), [#allocation10], 4294967104  ;;  %v1999_v0 = vmov 0.0   ;;  %v2227_v1 = vld [vmem:[%s3390_s4] ss:$0 sm:$0xff]  ;;  %v404_v3 = vld [vmem:[%s2176_s22] sm:$0xff] }
  0x41   : > { %453 = vst [vmem:[#allocation2 + $0x18] sm:$0x1] %v1999_v0  ;;  %v2229_v2 = vld [vmem:[#allocation9 + $0x1] ss:$0 sm:$0xff]  ;;  %v405_v4 = vld [vmem:[%s2176_s22 + $0x8] sm:$0xff]  ;;  %v2237_v5 = vadd.f32 %v2227_v1, %v404_v3  ;;  %v406_v6 = vld [vmem:[%s2176_s22 + $0x10] sm:$0xff] }
  0x42   : > { %452 = vst [vmem:[#allocation2] sm:$0x1] %v1999_v0  ;;  %v2241_v7 = vld [vmem:[%s2176_s22 + $0x18] sm:$0xff]  ;;  %v2244_v8 = vld [vmem:[%s2176_s22 + $0x20] sm:$0xff]  ;;  %v2248_v9 = vadd.f32 %v2227_v1, %v406_v6  ;;  %v2251_v10 = vmul.f32 %v2229_v2, %v404_v3  ;;  %v2264_v14 = vld [vmem:[%s2176_s22 + $0x28] sm:$0xff]  ;;  %v2271_v16 = vmul.f32 %v2229_v2, %v405_v4  ;;  %v2274_v17 = vmul.f32 %v2229_v2, %v406_v6  ;;  %s3022_s30 = scalar_lea.vmem [#allocation11], %s1659_s1 }
  0x43   : > { %454 = vst [vmem:[#allocation2 + $0x30] sm:$0x1] %v1999_v0  ;;  %v2253_v11 = vld [vmem:[#allocation9 + $0x5] ss:$0 sm:$0xff]  ;;  %v2257_v12 = vadd.f32 %v2227_v1, %v2241_v7  ;;  %v2261_v13 = vadd.f32 %v2227_v1, %v2244_v8  ;;  %v2267_v15 = vld [vmem:[%s2176_s22 + $0x30] sm:$0xff]  ;;  %v2278_v18 = vadd.f32 %v2227_v1, %v2264_v14  ;;  %v2285_v20 = vld [vmem:[%s2176_s22 + $0x38] sm:$0xff]  ;;  %v2293_v22 = vmul.f32 %v2229_v2, %v2241_v7 }
  0x44   : > { %455 = vst [vmem:[#allocation2 + $0x48] sm:$0x1] %v1999_v0  ;;  %v2282_v19 = vadd.f32 %v2227_v1, %v2267_v15  ;;  %v2289_v21 = vmul.f32 %v2253_v11, %v406_v6  ;;  %v2297_v23 = vmul.f32 %v2229_v2, %v2244_v8  ;;  %v2301_v24 = vadd.f32 %v2227_v1, %v2285_v20  ;;  %v2304_v25 = vld [vmem:[%s2176_s22 + $0x40] sm:$0xff]  ;;  %v2307_v26 = vld [vmem:[%s2176_s22 + $0x48] sm:$0xff]  ;;  %v2327_v31 = vld [vmem:[%s2176_s22 + $0x50] sm:$0xff]  ;;  %s1673_s17 = sshll.u32 %s1984_s21, 8 }
  0x45   : > { %456 = vst [vmem:[#allocation2 + $0x60] sm:$0x1] %v1999_v0  ;;  %v2312_v27 = vmul.f32 %v2253_v11, %v2244_v8  ;;  %v2316_v28 = vmul.f32 %v2229_v2, %v2264_v14  ;;  %v2320_v29 = vadd.f32 %v2227_v1, %v2304_v25  ;;  %v2324_v30 = vadd.f32 %v2227_v1, %v2307_v26  ;;  %v2330_v32 = vld [vmem:[%s2176_s22 + $0x58] sm:$0xff]  ;;  %v2350_v37 = vld [vmem:[%s2176_s22 + $0x60] sm:$0xff]  ;;  %v2353_v38 = vld [vmem:[%s2176_s22 + $0x68] sm:$0xff]  ;;  %s1494_s8 = scalar_lea.hbm %s3391_s5, %s1673_s17  ;;  %s1495_s21 = sshll.u32 %s3022_s30, 4  ;;  %s1496_s21 = int_to_ptr.vmem [resolvable:$true] %s1495_s21 }
  0x46   : > { %457 = vst [vmem:[#allocation2 + $0x78] sm:$0x1] %v1999_v0  ;;  %v2335_v33 = vmul.f32 %v2229_v2, %v2267_v15  ;;  %v2339_v34 = vmul.f32 %v2229_v2, %v2285_v20  ;;  %v2343_v35 = vadd.f32 %v2227_v1, %v2327_v31  ;;  %v2347_v36 = vadd.f32 %v2227_v1, %v2330_v32  ;;  %v2372_v43 = vld [vmem:[%s2176_s22 + $0x70] sm:$0xff]  ;;  %v2391_v48 = vld [vmem:[%s2176_s22 + $0x78] sm:$0xff]  ;;  %v2410_v53 = vld [vmem:[%s2176_s22 + $0x80] sm:$0xff]  ;;  %s1497_s9 = sshll.u32 %s1494_s8, 4  ;;  %s1498_s9 = int_to_ptr.hbm [resolvable:$true] %s1497_s9 }
  0x47   : > { %458 = vst [vmem:[#allocation2 + $0x90] sm:$0x1] %v1999_v0  ;;  %v2357_v39 = vmul.f32 %v2253_v11, %v2267_v15  ;;  %v2361_v40 = vmul.f32 %v2229_v2, %v2304_v25  ;;  %v2365_v41 = vadd.f32 %v2227_v1, %v2350_v37  ;;  %v2369_v42 = vadd.f32 %v2227_v1, %v2353_v38  ;;  %v2413_v54 = vld [vmem:[%s2176_s22 + $0x88] sm:$0xff]  ;;  %v2433_v59 = vld [vmem:[%s2176_s22 + $0x90] sm:$0xff]  ;;  %v2436_v60 = vld [vmem:[%s2176_s22 + $0x98] sm:$0xff]  ;;  %s1480_s12 = scalar_lea.sflag [#allocation5], %s2170_s3 }
  0x48   : > { %459 = vst [vmem:[#allocation2 + $0xa8] sm:$0x1] %v1999_v0  ;;  %v2376_v44 = vmul.f32 %v2253_v11, %v2304_v25  ;;  %v2380_v45 = vmul.f32 %v2229_v2, %v2307_v26  ;;  %v2384_v46 = vmul.f32 %v2229_v2, %v2327_v31  ;;  %v2388_v47 = vadd.f32 %v2227_v1, %v2372_v43  ;;  %v2438_v61 = vld [vmem:[#allocation9] ss:$0 sm:$0xff]  ;;  %s1916_s13 = sshra.s32 %s1498_s9, 4  ;;  %s1922_s16 = scalar_lea.hbm %s3391_s5, 512  ;;  %s1917_s13 = int_to_ptr.hbm [resolvable:$true] %s1916_s13 }
  0x49   : > { %460 = vst [vmem:[#allocation2 + $0xc0] sm:$0x1] %v1999_v0  ;;  %v2395_v49 = vmul.f32 %v2253_v11, %v2327_v31  ;;  %v2399_v50 = vmul.f32 %v2229_v2, %v2330_v32  ;;  %v2403_v51 = vmul.f32 %v2229_v2, %v2350_v37  ;;  %v2407_v52 = vadd.f32 %v2227_v1, %v2391_v48  ;;  %s1918_s6 = scalar_lea.hbm %s1917_s13, 256  ;;  %p1923_p10 = scmp.lt.s32.totalorder %s1917_s13, %s3391_s5 }
  0x4a   : > { %461 = vst [vmem:[#allocation2 + $0xd8] sm:$0x1] %v1999_v0  ;;  %v2418_v55 = vmul.f32 %v2253_v11, %v2350_v37  ;;  %v2422_v56 = vmul.f32 %v2229_v2, %v2353_v38  ;;  %v2426_v57 = vadd.f32 %v2227_v1, %v2410_v53  ;;  %v2430_v58 = vadd.f32 %v2227_v1, %v2413_v54  ;;  %p1919_p7 = scmp.ne.s32.totalorder %s1917_s13, %s1918_s6  ;;  %p1924_p11 = scmp.lt.s32.totalorder %s1922_s16, %s1918_s6 }
  0x4b   : > { %462 = vst [vmem:[#allocation2 + $0xf0] sm:$0x1] %v1999_v0  ;;  %v2443_v62 = vmul.f32 %v2229_v2, %v2372_v43  ;;  %v2447_v63 = vmul.f32 %v2229_v2, %v2391_v48 }
  0x4c   : > { %463 = vst [vmem:[#allocation2 + $0x108] sm:$0x1] %v1999_v0  ;;  %p1920_p8 = pnand %p1919_p7, %p2124_p0  ;;  %p1925_p12 = por %p1924_p11, %p1923_p10 }
  0x4d   : > { %464 = vst [vmem:[#allocation2 + $0x120] sm:$0x1] %v1999_v0 }
  0x4e   : > { %465 = vst [vmem:[#allocation2 + $0x138] sm:$0x1] %v1999_v0  ;;  %p1921_p9 = pneg %p1920_p8 }
  0x4f   : > { %466 = vst [vmem:[#allocation2 + $0x150] sm:$0x1] %v1999_v0 }
  0x50   : > { %467 = vst [vmem:[#allocation2 + $0x168] sm:$0x1] %v1999_v0  ;;  %p1926_p13 = pnand %p1925_p12, %p1921_p9 }
  0x51   : > { %468 = vst [vmem:[#allocation2 + $0x180] sm:$0x1] %v1999_v0 }
  0x52   : > { %469 = vst [vmem:[#allocation2 + $0x198] sm:$0x1] %v1999_v0 }
  0x53   : > { %470 = vst [vmem:[#allocation2 + $0x11] sm:$0x1] %v1999_v0 }
  0x54   : > { %471 = vst [vmem:[#allocation2 + $0x29] sm:$0x1] %v1999_v0 }
  0x55   : > { %472 = vst [vmem:[#allocation2 + $0x41] sm:$0x1] %v1999_v0 }
  0x56   : > { %473 = vst [vmem:[#allocation2 + $0x59] sm:$0x1] %v1999_v0 }
  0x57   : > { %474 = vst [vmem:[#allocation2 + $0x71] sm:$0x1] %v1999_v0 }
  0x58   : > { %475 = vst [vmem:[#allocation2 + $0x89] sm:$0x1] %v1999_v0 }
  0x59   : > { %476 = vst [vmem:[#allocation2 + $0xa1] sm:$0x1] %v1999_v0 }
  0x5a   : > { %477 = vst [vmem:[#allocation2 + $0xb9] sm:$0x1] %v1999_v0 }
  0x5b   : > { %478 = vst [vmem:[#allocation2 + $0xd1] sm:$0x1] %v1999_v0 }
  0x5c   : > { %479 = vst [vmem:[#allocation2 + $0xe9] sm:$0x1] %v1999_v0 }
  0x5d   : > { %3514 = vst [vmem:[#allocation23_spill] sm:$0xff] %v2227_v1 }
  0x5e   : > { %480 = vst [vmem:[#allocation2 + $0x101] sm:$0x1] %v1999_v0 }
  0x5f   : > { %481 = vst [vmem:[#allocation2 + $0x119] sm:$0x1] %v1999_v0 }
  0x60   : > { %482 = vst [vmem:[#allocation2 + $0x131] sm:$0x1] %v1999_v0 }
  0x61   : > { %3515 = vst [vmem:[#allocation24_spill] sm:$0xff] %v2237_v5  ;;  %v2463_v5 = vld [vmem:[#allocation9 + $0x2] ss:$0 sm:$0xff] }
  0x62   : > { %3516 = vst [vmem:[#allocation25_spill] sm:$0xff] %v2241_v7 }
  0x63   : > { %3517 = vst [vmem:[#allocation26_spill] sm:$0xff] %v2244_v8 }
  0x64   : > { %483 = vst [vmem:[#allocation2 + $0x149] sm:$0x1] %v1999_v0 }
  0x65   : > { %3518 = vst [vmem:[#allocation27_spill] sm:$0xff] %v2264_v14 }
  0x66   : > { %3519 = vst [vmem:[#allocation28_spill] sm:$0xff] %v2267_v15 }
  0x67   : > { %484 = vst [vmem:[#allocation2 + $0x161] sm:$0x1] %v1999_v0 }
  0x68   : > { %3520 = vst [vmem:[#allocation29_spill] sm:$0xff] %v2285_v20 }
  0x69   : > { %485 = vst [vmem:[#allocation2 + $0x179] sm:$0x1] %v1999_v0 }
  0x6a   : > { %3521 = vst [vmem:[#allocation30_spill] sm:$0xff] %v2304_v25 }
  0x6b   : > { %3522 = vst [vmem:[#allocation31_spill] sm:$0xff] %v2307_v26 }
  0x6c   : > { %486 = vst [vmem:[#allocation2 + $0x191] sm:$0x1] %v1999_v0 }
  0x6d   : > { %3523 = vst [vmem:[#allocation32_spill] sm:$0xff] %v2327_v31 }
  0x6e   : > { %3524 = vst [vmem:[#allocation33_spill] sm:$0xff] %v2330_v32 }
  0x6f   : > { %487 = vst [vmem:[#allocation2 + $0x1a9] sm:$0x1] %v1999_v0  ;;  %v2451_v0 = vadd.f32 %v2227_v1, %v2433_v59 }
  0x70   : > { %3525 = vst [vmem:[#allocation34_spill] sm:$0xff] %v2350_v37 }
  0x71   : > { %3526 = vst [vmem:[#allocation35_spill] sm:$0xff] %v2353_v38 }
  0x72   : > { %491 = vst [vmem:[#allocation2 + $0x19] sm:$0xff] %v404_v3  ;;  %v2455_v3 = vadd.f32 %v2227_v1, %v2436_v60 }
  0x73   : > { %3527 = vst [vmem:[#allocation36_spill] sm:$0xff] %v2369_v42 }
  0x74   : > { %3528 = vst [vmem:[#allocation37_spill] sm:$0xff] %v2372_v43 }
  0x75   : > { %492 = vst [vmem:[#allocation2 + $0x21] sm:$0xff] %v405_v4  ;;  %v2458_v4 = vld [vmem:[%s2176_s22 + $0xa0] sm:$0xff] }
  0x76   : > { %3529 = vst [vmem:[#allocation38_spill] sm:$0xff] %v2376_v44 }
  0x77   : > { %3530 = vst [vmem:[#allocation39_spill] sm:$0xff] %v2391_v48 }
  0x78   : > { %493 = vst [vmem:[#allocation2 + $0x31] sm:$0xff] %v406_v6  ;;  %v2461_v6 = vld [vmem:[%s2176_s22 + $0xa8] sm:$0xff] }
  0x79   : > { %3531 = vst [vmem:[#allocation40_spill] sm:$0xff] %v2395_v49  ;;  %v437_v49 = vld [vmem:[%s2184_s24 + $0x8] sm:$0xff] }
  0x7a   : > { %3532 = vst [vmem:[#allocation41_spill] sm:$0xff] %v2399_v50 }
  0x7b   : > { %3533 = vst [vmem:[#allocation42_spill] sm:$0xff] %v2403_v51  ;;  %v2564_v51 = vld [vmem:[%s2176_s22 + $0xd8] sm:$0xff] }
  0x7c   : > { %3534 = vst [vmem:[#allocation43_spill] sm:$0xff] %v2407_v52  ;;  %v760_v52 = vld [vmem:[#allocation2 + $0x1a] sm:$0xff] }
  0x7d   : > { %3535 = vst [vmem:[#allocation44_spill] sm:$0xff] %v2410_v53 }
  0x7e   : > { %3536 = vst [vmem:[#allocation45_spill] sm:$0xff] %v2413_v54 }
  0x7f   : > { %494 = vst [vmem:[#allocation2 + $0x39] sm:$0xff] %v2241_v7  ;;  %v2468_v7 = vmul.f32 %v2253_v11, %v2372_v43 }
  0x80   : > { %3537 = vst [vmem:[#allocation46_spill] sm:$0xff] %v2418_v55  ;;  %v2505_v55 = vld [vmem:[%s2176_s22 + $0xb8] sm:$0xff] }
  0x81   : > { %3538 = vst [vmem:[#allocation47_spill] sm:$0xff] %v2422_v56  ;;  %v2483_v56 = vld [vmem:[%s2176_s22 + $0xb0] sm:$0xff] }
  0x82   : > { %3539 = vst [vmem:[#allocation48_spill] sm:$0xff] %v2426_v57  ;;  %v858_v57 = vld [vmem:[#allocation2 + $0x30] sm:$0xff] }
  0x83   : > { %3540 = vst [vmem:[#allocation49_spill] sm:$0xff] %v2430_v58 }
  0x84   : > { %3541 = vst [vmem:[#allocation50_spill] sm:$0xff] %v2433_v59 }
  0x85   : > { %3542 = vst [vmem:[#allocation51_spill] sm:$0xff] %v2436_v60 }
  0x86   : > { %495 = vst [vmem:[#allocation2 + $0x49] sm:$0xff] %v2244_v8  ;;  %v2472_v8 = vmul.f32 %v2229_v2, %v2410_v53  ;;  %v2568_v44 = vld [vmem:[#allocation2 + $0x32] sm:$0xff] }
  0x87   : > { %3543 = vst [vmem:[#allocation52_spill] sm:$0xff] %v2443_v62  ;;  %v2531_v62 = vld [vmem:[%s2176_s22 + $0xd0] sm:$0xff] }
  0x88   : > { %3544 = vst [vmem:[#allocation53_spill] sm:$0xff] %v2447_v63  ;;  %v2480_v63 = vadd.f32 %v2227_v1, %v2461_v6 }
  0x89   : > { %3545 = vst [vmem:[#allocation54_spill] sm:$0xff] %v2451_v0  ;;  %v2508_v0 = vld [vmem:[%s2176_s22 + $0xc0] sm:$0xff] }
  0x8a   : > { %3546 = vst [vmem:[#allocation55_spill] sm:$0xff] %v2455_v3  ;;  %v2476_v3 = vadd.f32 %v2227_v1, %v2458_v4  ;;  %v2528_v58 = vadd.f32 %v2227_v1, %v2508_v0 }
  0x8b   : > { %3547 = vst [vmem:[#allocation56_spill] sm:$0xff] %v2458_v4 }
  0x8c   : > { %3548 = vst [vmem:[#allocation57_spill] sm:$0xff] %v2461_v6 }
  0x8d   : > { %496 = vst [vmem:[#allocation2 + $0x51] sm:$0xff] %v2264_v14  ;;  %v2485_v14 = vld [vmem:[#allocation9 + $0x4] ss:$0 sm:$0xff]  ;;  %v2581_v42 = vld [vmem:[#allocation2 + $0x48] sm:$0xff] }
  0x8e   : > { %3549 = vst [vmem:[#allocation58_spill] sm:$0xff] %v2468_v7  ;;  %v2490_v7 = vmul.f32 %v2253_v11, %v2410_v53 }
  0x8f   : > { %3550 = vst [vmem:[#allocation59_spill] sm:$0xff] %v2472_v8  ;;  %v2494_v8 = vmul.f32 %v2229_v2, %v2413_v54 }
  0x90   : > { %3551 = vst [vmem:[#allocation60_spill] sm:$0xff] %v2476_v3  ;;  %v2498_v3 = vmul.f32 %v2229_v2, %v2433_v59 }
  0x91   : > { %3552 = vst [vmem:[#allocation61_spill] sm:$0xff] %v2480_v63  ;;  %v2502_v63 = vadd.f32 %v2227_v1, %v2483_v56 }
  0x92   : > { %3553 = vst [vmem:[#allocation62_spill] sm:$0xff] %v2483_v56 }
  0x93   : > { %497 = vst [vmem:[#allocation2 + $0x61] sm:$0xff] %v2267_v15  ;;  %v2511_v15 = vld [vmem:[%s2176_s22 + $0xc8] sm:$0xff] }
  0x94   : > { %3554 = vst [vmem:[#allocation63_spill] sm:$0xff] %v2490_v7  ;;  %v564_v7 = vld [vmem:[#allocation2 + $0x18] sm:$0xff] }
  0x95   : > { %3555 = vst [vmem:[#allocation64_spill] sm:$0xff] %v2494_v8  ;;  %v2516_v8 = vmul.f32 %v2229_v2, %v2436_v60  ;;  %v598_v50 = vmul.f32 %v2438_v61, %v564_v7 }
  0x96   : > { %3556 = vst [vmem:[#allocation65_spill] sm:$0xff] %v2498_v3  ;;  %v2520_v3 = vmul.f32 %v2229_v2, %v2458_v4 }
  0x97   : > { %3557 = vst [vmem:[#allocation66_spill] sm:$0xff] %v2502_v63  ;;  %v2524_v63 = vadd.f32 %v2227_v1, %v2505_v55 }
  0x98   : > { %3558 = vst [vmem:[#allocation67_spill] sm:$0xff] %v2505_v55 }
  0x99   : > { %3559 = vst [vmem:[#allocation68_spill] sm:$0xff] %v2508_v0 }
  0x9a   : > { %3560 = vst [vmem:[#allocation69_spill] sm:$0xff] %v2511_v15 }
  0x9b   : > { %498 = vst [vmem:[#allocation2 + $0x69] sm:$0xff] %v2285_v20  ;;  %v436_v20 = vld [vmem:[%s2184_s24] sm:$0xff] }
  0x9c   : > { %3561 = vst [vmem:[#allocation70_spill] sm:$0xff] %v2516_v8  ;;  %v565_v8 = vld [vmem:[#allocation2 + $0x20] sm:$0xff] }
  0x9d   : > { %3562 = vst [vmem:[#allocation71_spill] sm:$0xff] %v2520_v3  ;;  %v2538_v3 = vmul.f32 %v2253_v11, %v2433_v59  ;;  %v599_v7 = vmul.f32 %v2438_v61, %v565_v8  ;;  %v600_v8 = vmul.f32 %v2438_v61, %v858_v57 }
  0x9e   : > { %3563 = vst [vmem:[#allocation72_spill] sm:$0xff] %v2524_v63  ;;  %v2542_v63 = vmul.f32 %v2229_v2, %v2461_v6 }
  0x9f   : > { %3564 = vst [vmem:[#allocation73_spill] sm:$0xff] %v2528_v58  ;;  %v2546_v58 = vadd.f32 %v2227_v1, %v2511_v15 }
  0xa0   : > { %3565 = vst [vmem:[#allocation74_spill] sm:$0xff] %v2531_v62 }
  0xa1   : > { %499 = vst [vmem:[#allocation2 + $0x79] sm:$0xff] %v2304_v25  ;;  %v2553_v25 = vmul.f32 %v2253_v11, %v2458_v4 }
  0xa2   : > { %3566 = vst [vmem:[#allocation75_spill] sm:$0xff] %v2538_v3  ;;  %v2557_v3 = vmul.f32 %v2229_v2, %v2483_v56 }
  0xa3   : > { %3567 = vst [vmem:[#allocation76_spill] sm:$0xff] %v2542_v63  ;;  %v2561_v63 = vadd.f32 %v2227_v1, %v2531_v62  ;;  %v631_v62 = vadd.f32 %v599_v7, %v2257_v12  ;;  %v796_v12 = vmul.f32 %v2463_v5, %v2568_v44  ;;  %v2598_v7 = vld [vmem:[#allocation2 + $0x4a] sm:$0xff] }
  0xa4   : > { %3568 = vst [vmem:[#allocation77_spill] sm:$0xff] %v2546_v58  ;;  %v630_v58 = vadd.f32 %v598_v50, %v2248_v9  ;;  %v2586_v50 = vmul.f32 0.0, %v437_v49  ;;  %v2600_v49 = vld [vmem:[#allocation2 + $0x60] sm:$0xff] }
  0xa5   : > { %500 = vst [vmem:[#allocation2 + $0x81] sm:$0xff] %v2307_v26  ;;  %v2570_v26 = vld [vmem:[#allocation2 + $0x38] sm:$0xff] }
  0xa6   : > { %3569 = vst [vmem:[#allocation78_spill] sm:$0xff] %v2553_v25  ;;  %v2575_v25 = vadd.f32 %v2227_v1, %v2564_v51  ;;  %v601_v9 = vmul.f32 %v2438_v61, %v2570_v26  ;;  %v893_v1 = vmul.f32 %v2485_v14, %v858_v57  ;;  %v2611_v57 = vmul.f32 %v2229_v2, %v2505_v55 }
  0xa7   : > { %3570 = vst [vmem:[#allocation79_spill] sm:$0xff] %v2557_v3  ;;  %v2577_v3 = vmul.f32 0.0, %v436_v20  ;;  %v632_v20 = vadd.f32 %v600_v8, %v2261_v13  ;;  %v2607_v13 = vmul.f32 %v2253_v11, %v2483_v56 }
  0xa8   : > { %3571 = vst [vmem:[#allocation80_spill] sm:$0xff] %v2561_v63  ;;  %v794_v63 = vmul.f32 %v2463_v5, %v760_v52  ;;  %v602_v52 = vmul.f32 %v2438_v61, %v2581_v42 }
  0xa9   : > { %3572 = vst [vmem:[#allocation81_spill] sm:$0xff] %v2568_v44  ;;  %v730_v8 = vadd.f32 %v2274_v17, %v632_v20  ;;  %v2627_v17 = vld [vmem:[#allocation2 + $0x62] sm:$0xff] }
  0xaa   : > { %3573 = vst [vmem:[#allocation82_spill] sm:$0xff] %v2570_v26  ;;  %v2616_v26 = vld [vmem:[#allocation2 + $0x68] sm:$0xff] }
  0xab   : > { %501 = vst [vmem:[#allocation2 + $0x91] sm:$0xff] %v2327_v31  ;;  %v728_v31 = vadd.f32 %v2251_v10, %v630_v58  ;;  %v605_v20 = vmul.f32 %v2438_v61, %v2616_v26 }
  0xac   : > { %3574 = vst [vmem:[#allocation83_spill] sm:$0xff] %v2575_v25  ;;  %v2593_v25 = vld [vmem:[#allocation2 + $0x50] sm:$0xff] }
  0xad   : > { %502 = vst [vmem:[#allocation2 + $0x99] sm:$0xff] %v2330_v32  ;;  %v603_v10 = vmul.f32 %v2438_v61, %v2593_v25  ;;  %v826_v58 = vadd.f32 %v794_v63, %v728_v31  ;;  %v633_v32 = vadd.f32 %v601_v9, %v2278_v18  ;;  %v604_v31 = vmul.f32 %v2438_v61, %v2600_v49  ;;  %v2629_v18 = vld [vmem:[#allocation2 + $0x78] sm:$0xff] }
  0xae   : > { %3575 = vst [vmem:[#allocation84_spill] sm:$0xff] %v2593_v25  ;;  %v895_v25 = vmul.f32 %v2485_v14, %v2581_v42 }
  0xaf   : > { %503 = vst [vmem:[#allocation2 + $0xa9] sm:$0xff] %v2350_v37  ;;  %v634_v37 = vadd.f32 %v602_v52, %v2282_v19  ;;  %v635_v44 = vadd.f32 %v603_v10, %v2301_v24  ;;  %v828_v19 = vadd.f32 %v796_v12, %v730_v8  ;;  %v925_v24 = vadd.f32 %v893_v1, %v826_v58 }
  0xb0   : > { %504 = vst [vmem:[#allocation2 + $0xb1] sm:$0xff] %v2353_v38  ;;  %v2620_v38 = vadd.f32 %v2271_v16, %v631_v62  ;;  %v798_v16 = vmul.f32 %v2463_v5, %v2598_v7  ;;  %v897_v62 = vmul.f32 %v2485_v14, %v2600_v49  ;;  %v636_v9 = vadd.f32 %v604_v31, %v2320_v29  ;;  %v2653_v29 = vld [vmem:[#allocation2 + $0x7a] sm:$0xff] }
  0xb1   : > { %505 = vst [vmem:[#allocation2 + $0xc1] sm:$0xff] %v2372_v43  ;;  %v732_v63 = vadd.f32 %v2297_v23, %v634_v37  ;;  %v606_v52 = vmul.f32 %v2438_v61, %v2629_v18  ;;  %v2645_v23 = vld [vmem:[#allocation2 + $0x80] sm:$0xff]  ;;  %v927_v37 = vadd.f32 %v895_v25, %v828_v19  ;;  %v2649_v10 = vadd.f32 %v2293_v22, %v633_v32 }
  0xb2   : > { %506 = vst [vmem:[#allocation2 + $0xc9] sm:$0xff] %v2391_v48  ;;  %v2643_v12 = vld [vmem:[#allocation2 + $0x90] sm:$0xff]  ;;  %v800_v1 = vmul.f32 %v2463_v5, %v2627_v17  ;;  %v2657_v58 = vadd.f32 %v2316_v28, %v635_v44  ;;  %v734_v31 = vadd.f32 %v2335_v33, %v636_v9  ;;  %v637_v32 = vadd.f32 %v605_v20, %v2324_v30  ;;  %v2766_v48 = vld [vmem:[%s2176_s22 + $0xf0] sm:$0xff] }
  0xb3   : > { %507 = vst [vmem:[#allocation2 + $0xd9] sm:$0xff] %v2410_v53  ;;  %v830_v8 = vadd.f32 %v798_v16, %v732_v63  ;;  %v638_v25 = vadd.f32 %v606_v52, %v2343_v35  ;;  %v607_v19 = vmul.f32 %v2438_v61, %v2645_v23  ;;  %v608_v63 = vmul.f32 %v2438_v61, %v2643_v12 }
  0xb4   : > { %508 = vst [vmem:[#allocation2 + $0xe1] sm:$0xff] %v2413_v54  ;;  %v899_v54 = vmul.f32 %v2485_v14, %v2629_v18  ;;  %v2671_v44 = vld [vmem:[#allocation2 + $0x98] sm:$0xff]  ;;  %v2675_v33 = vadd.f32 %v2289_v21, %v925_v24  ;;  %v832_v35 = vadd.f32 %v800_v1, %v734_v31  ;;  %v802_v30 = vmul.f32 %v2463_v5, %v2653_v29 }
  0xb5   : > { %509 = vst [vmem:[#allocation2 + $0xf1] sm:$0xff] %v2433_v59  ;;  %v929_v22 = vadd.f32 %v897_v62, %v830_v8  ;;  %v736_v16 = vadd.f32 %v2361_v40, %v638_v25  ;;  %v2680_v62 = vld [vmem:[#allocation2 + $0x92] sm:$0xff]  ;;  %v2684_v9 = vadd.f32 %v2312_v27, %v927_v37  ;;  %v901_v20 = vmul.f32 %v2485_v14, %v2643_v12 }
  0xb6   : > { %510 = vst [vmem:[#allocation2 + $0xf9] sm:$0xff] %v2436_v60  ;;  %v2669_v28 = vld [vmem:[#allocation2 + $0xa8] sm:$0xff]  ;;  %v639_v52 = vadd.f32 %v607_v19, %v2347_v36  ;;  %v640_v21 = vadd.f32 %v608_v63, %v2365_v41  ;;  %v931_v40 = vadd.f32 %v899_v54, %v832_v35  ;;  %v609_v8 = vmul.f32 %v2438_v61, %v2671_v44 }
  0xb7   : > { %3576 = vst [vmem:[#allocation85_spill] sm:$0xff] %v2669_v28  ;;  %v834_v24 = vadd.f32 %v802_v30, %v736_v16  ;;  %v610_v1 = vmul.f32 %v2438_v61, %v2669_v28  ;;  %v2697_v27 = vld [vmem:[#allocation2 + $0xb0] sm:$0xff]  ;;  %v2701_v36 = vadd.f32 %v2357_v39, %v929_v22  ;;  %v2704_v41 = vadd.f32 %v2339_v34, %v637_v32  ;;  %v3585_v16 = vld [vmem:[#allocation36_spill] sm:$0xff] }
  0xb8   : > { %3577 = vst [vmem:[#allocation86_spill] sm:$0xff] %v2671_v44  ;;  %v2695_v31 = vld [vmem:[#allocation2 + $0xc0] sm:$0xff]  ;;  %v738_v54 = vadd.f32 %v2384_v46, %v640_v21  ;;  %v804_v37 = vmul.f32 %v2463_v5, %v2680_v62  ;;  %v2709_v25 = vld [vmem:[#allocation2 + $0xaa] sm:$0xff]  ;;  %v2713_v63 = vadd.f32 %v2380_v45, %v639_v52  ;;  %v903_v39 = vmul.f32 %v2485_v14, %v2669_v28  ;;  %v2735_v21 = vld [vmem:[%s2176_s22 + $0xe8] sm:$0xff] }
  0xb9   : > { %511 = vst [vmem:[#allocation2 + $0x109] sm:$0xff] %v2458_v4  ;;  %v933_v19 = vadd.f32 %v901_v20, %v834_v24  ;;  %v642_v34 = vadd.f32 %v610_v1, %v2388_v47  ;;  %v2718_v22 = vld [vmem:[#allocation2 + $0xc2] sm:$0xff]  ;;  %v2724_v32 = vld [vmem:[%s2176_s22 + $0xe0] sm:$0xff]  ;;  %v641_v30 = vadd.f32 %v609_v8, %v3585_v16  ;;  %v611_v45 = vmul.f32 %v2438_v61, %v2697_v27 }
  0xba   : > { %512 = vst [vmem:[#allocation2 + $0x111] sm:$0xff] %v2461_v6  ;;  %v2720_v46 = vld [vmem:[#allocation2 + $0xc8] sm:$0xff]  ;;  %v836_v35 = vadd.f32 %v804_v37, %v738_v54  ;;  %v612_v20 = vmul.f32 %v2438_v61, %v2695_v31  ;;  %v2731_v52 = vld [vmem:[#allocation2 + $0xd8] sm:$0xff]  ;;  %v806_v8 = vmul.f32 %v2463_v5, %v2709_v25  ;;  %v905_v54 = vmul.f32 %v2485_v14, %v2695_v31 }
  0xbb   : > { %513 = vst [vmem:[#allocation2 + $0x121] sm:$0xff] %v2483_v56  ;;  %v3587_v47 = vld [vmem:[#allocation74_spill] sm:$0xff]  ;;  %v3590_v16 = vld [vmem:[#allocation48_spill] sm:$0xff]  ;;  %v808_v60 = vmul.f32 %v2463_v5, %v2718_v22  ;;  %v907_v43 = vmul.f32 %v2485_v14, %v2731_v52 }
  0xbc   : > { %3578 = vst [vmem:[#allocation87_spill] sm:$0xff] %v2695_v31  ;;  %v3588_v24 = vld [vmem:[#allocation38_spill] sm:$0xff]  ;;  %v935_v37 = vadd.f32 %v903_v39, %v836_v35  ;;  %v644_v56 = vadd.f32 %v612_v20, %v3590_v16  ;;  %v3594_v4 = vld [vmem:[#allocation40_spill] sm:$0xff]  ;;  %v3595_v35 = vld [vmem:[#allocation43_spill] sm:$0xff]  ;;  %v614_v16 = vmul.f32 %v2438_v61, %v2731_v52 }
  0xbd   : > { %3579 = vst [vmem:[#allocation88_spill] sm:$0xff] %v2697_v27  ;;  %v2738_v1 = vadd.f32 %v3588_v24, %v931_v40  ;;  %v613_v40 = vmul.f32 %v2438_v61, %v2720_v46  ;;  %v2755_v24 = vld [vmem:[#allocation2 + $0xe0] sm:$0xff]  ;;  %v2759_v59 = vadd.f32 %v3594_v4, %v933_v19  ;;  %v643_v20 = vadd.f32 %v611_v45, %v3595_v35  ;;  %v3599_v4 = vld [vmem:[#allocation49_spill] sm:$0xff]  ;;  %v3600_v45 = vld [vmem:[#allocation54_spill] sm:$0xff] }
  0xbe   : > { %514 = vst [vmem:[#allocation2 + $0x129] sm:$0xff] %v2505_v55  ;;  %v3589_v55 = vld [vmem:[#allocation42_spill] sm:$0xff]  ;;  %v3610_v44 = vld [vmem:[#allocation60_spill] sm:$0xff] }
  0xbf   : > { %3580 = vst [vmem:[#allocation89_spill] sm:$0xff] %v2709_v25  ;;  %v740_v6 = vadd.f32 %v3589_v55, %v642_v34  ;;  %v2751_v55 = vld [vmem:[#allocation2 + $0xda] sm:$0xff]  ;;  %v2753_v34 = vld [vmem:[#allocation2 + $0xf0] sm:$0xff]  ;;  %v645_v19 = vadd.f32 %v613_v40, %v3599_v4 }
  0xc0   : > { %515 = vst [vmem:[#allocation2 + $0x139] sm:$0xff] %v2508_v0  ;;  %v810_v35 = vmul.f32 %v2463_v5, %v2751_v55  ;;  %v2790_v40 = vld [vmem:[#allocation2 + $0xf8] sm:$0xff] }
  0xc1   : > { %3581 = vst [vmem:[#allocation90_spill] sm:$0xff] %v2713_v63  ;;  %v838_v39 = vadd.f32 %v806_v8, %v740_v6  ;;  %v2777_v6 = vld [vmem:[%s2176_s22 + $0xf8] sm:$0xff]  ;;  %v646_v8 = vadd.f32 %v614_v16, %v3600_v45  ;;  %v3609_v25 = vld [vmem:[#allocation59_spill] sm:$0xff]  ;;  %v2807_v28 = vld [vmem:[#allocation2 + $0x110] sm:$0xff] }
  0xc2   : > { %3582 = vst [vmem:[#allocation91_spill] sm:$0xff] %v2718_v22  ;;  %v3598_v22 = vld [vmem:[#allocation52_spill] sm:$0xff] }
  0xc3   : > { %3583 = vst [vmem:[#allocation92_spill] sm:$0xff] %v2720_v46  ;;  %v3596_v46 = vld [vmem:[#allocation41_spill] sm:$0xff]  ;;  %v742_v27 = vadd.f32 %v3598_v22, %v644_v56  ;;  %v616_v56 = vmul.f32 %v2438_v61, %v2753_v34  ;;  %v937_v16 = vadd.f32 %v905_v54, %v838_v39  ;;  %v744_v63 = vadd.f32 %v3609_v25, %v646_v8  ;;  %v2819_v25 = vld [vmem:[#allocation2 + $0x120] sm:$0xff] }
  0xc4   : > { %516 = vst [vmem:[#allocation2 + $0x141] sm:$0xff] %v2511_v15  ;;  %v2769_v53 = vadd.f32 %v3596_v46, %v641_v30  ;;  %v615_v46 = vmul.f32 %v2438_v61, %v2755_v24  ;;  %v2786_v22 = vld [vmem:[#allocation2 + $0xf2] sm:$0xff]  ;;  %v2788_v30 = vld [vmem:[#allocation2 + $0x108] sm:$0xff] }
  0xc5   : > { %3584 = vst [vmem:[#allocation93_spill] sm:$0xff] %v2724_v32  ;;  %v840_v45 = vadd.f32 %v808_v60, %v742_v27  ;;  %v3612_v60 = vld [vmem:[#allocation55_spill] sm:$0xff]  ;;  %v812_v54 = vmul.f32 %v2463_v5, %v2786_v22  ;;  %v842_v39 = vadd.f32 %v810_v35, %v744_v63  ;;  %v911_v8 = vmul.f32 %v2485_v14, %v2788_v30 }
  0xc6   : > { %3586 = vst [vmem:[#allocation36_spill] sm:$0xff] %v2731_v52  ;;  %v647_v27 = vadd.f32 %v615_v46, %v3612_v60  ;;  %v3615_v46 = vld [vmem:[#allocation58_spill] sm:$0xff]  ;;  %v620_v35 = vmul.f32 %v2438_v61, %v2819_v25 }
  0xc7   : > { %517 = vst [vmem:[#allocation2 + $0x151] sm:$0xff] %v3587_v47 }
  0xc8   : > { %518 = vst [vmem:[#allocation2 + $0x159] sm:$0xff] %v2564_v51 }
  0xc9   : > { %3591 = vst [vmem:[#allocation38_spill] sm:$0xff] %v2751_v55  ;;  %v909_v55 = vmul.f32 %v2485_v14, %v2753_v34 }
  0xca   : > { %3592 = vst [vmem:[#allocation42_spill] sm:$0xff] %v2753_v34  ;;  %v2831_v34 = vld [vmem:[#allocation2 + $0x122] sm:$0xff] }
  0xcb   : > { %3593 = vst [vmem:[#allocation48_spill] sm:$0xff] %v2755_v24  ;;  %v3605_v24 = vld [vmem:[#allocation47_spill] sm:$0xff] }
  0xcc   : > { %519 = vst [vmem:[#allocation2 + $0x169] sm:$0xff] %v2724_v32  ;;  %v2800_v52 = vadd.f32 %v3605_v24, %v643_v20  ;;  %v2817_v24 = vld [vmem:[#allocation2 + $0x10a] sm:$0xff] }
  0xcd   : > { %520 = vst [vmem:[#allocation2 + $0x171] sm:$0xff] %v2735_v21  ;;  %v3614_v20 = vld [vmem:[#allocation65_spill] sm:$0xff]  ;;  %v814_v63 = vmul.f32 %v2463_v5, %v2817_v24 }
  0xce   : > { %3597 = vst [vmem:[#allocation40_spill] sm:$0xff] %v2769_v53  ;;  %v3607_v53 = vld [vmem:[#allocation53_spill] sm:$0xff] }
  0xcf   : > { %488 = vst [vmem:[#allocation2 + $0x1] sm:$0xff] %v2577_v3  ;;  %v3604_v3 = vld [vmem:[#allocation46_spill] sm:$0xff]  ;;  %v2803_v31 = vadd.f32 %v3607_v53, %v645_v19  ;;  %v618_v53 = vmul.f32 %v2438_v61, %v2788_v30 }
  0xd0   : > { %3601 = vst [vmem:[#allocation43_spill] sm:$0xff] %v2786_v22  ;;  %v2794_v4 = vadd.f32 %v3604_v3, %v935_v37  ;;  %v617_v37 = vmul.f32 %v2438_v61, %v2790_v40  ;;  %v3617_v3 = vld [vmem:[#allocation61_spill] sm:$0xff] }
  0xd1   : > { %3602 = vst [vmem:[#allocation41_spill] sm:$0xff] %v2788_v30  ;;  %v3627_v30 = vld [vmem:[#allocation70_spill] sm:$0xff] }
  0xd2   : > { %3603 = vst [vmem:[#allocation52_spill] sm:$0xff] %v2790_v40  ;;  %v649_v60 = vadd.f32 %v617_v37, %v3617_v3  ;;  %v3618_v40 = vld [vmem:[#allocation66_spill] sm:$0xff]  ;;  %v3626_v3 = vld [vmem:[#allocation73_spill] sm:$0xff] }
  0xd3   : > { %489 = vst [vmem:[#allocation2 + $0x9] sm:$0xff] %v2586_v50  ;;  %v648_v50 = vadd.f32 %v616_v56, %v3610_v44  ;;  %v939_v44 = vadd.f32 %v907_v43, %v840_v45  ;;  %v2825_v56 = vadd.f32 %v3615_v46, %v937_v16  ;;  %v650_v22 = vadd.f32 %v618_v53, %v3618_v40  ;;  %v2837_v45 = vld [vmem:[#allocation2 + $0x138] sm:$0xff]  ;;  %v2839_v16 = vld [vmem:[#allocation2 + $0x128] sm:$0xff] }
  0xd4   : > { %521 = vst [vmem:[#allocation2 + $0x181] sm:$0xff] %v2766_v48  ;;  %v3623_v40 = vld [vmem:[#allocation71_spill] sm:$0xff] }
  0xd5   : > { %3606 = vst [vmem:[#allocation49_spill] sm:$0xff] %v2800_v52  ;;  %v746_v19 = vadd.f32 %v3614_v20, %v648_v50  ;;  %v941_v52 = vadd.f32 %v909_v55, %v842_v39  ;;  %v3622_v50 = vld [vmem:[#allocation64_spill] sm:$0xff]  ;;  %v748_v53 = vadd.f32 %v3623_v40, %v650_v22  ;;  %v913_v20 = vmul.f32 %v2485_v14, %v2819_v25  ;;  %v3625_v39 = vld [vmem:[#allocation63_spill] sm:$0xff] }
  0xd6   : > { %3608 = vst [vmem:[#allocation54_spill] sm:$0xff] %v2803_v31  ;;  %v619_v31 = vmul.f32 %v2438_v61, %v2807_v28  ;;  %v2842_v37 = vadd.f32 %v3622_v50, %v647_v27  ;;  %v3624_v55 = vld [vmem:[#allocation72_spill] sm:$0xff]  ;;  %v621_v22 = vmul.f32 %v2438_v61, %v2839_v16  ;;  %v622_v50 = vmul.f32 %v2438_v61, %v2837_v45 }
  0xd7   : > { %3611 = vst [vmem:[#allocation46_spill] sm:$0xff] %v2807_v28  ;;  %v844_v43 = vadd.f32 %v812_v54, %v746_v19  ;;  %v2849_v19 = vadd.f32 %v3625_v39, %v939_v44  ;;  %v652_v28 = vadd.f32 %v620_v35, %v3626_v3  ;;  %v846_v27 = vadd.f32 %v814_v63, %v748_v53  ;;  %v3630_v44 = vld [vmem:[#allocation75_spill] sm:$0xff]  ;;  %v3633_v53 = vld [vmem:[#allocation76_spill] sm:$0xff] }
  0xd8   : > { %522 = vst [vmem:[#allocation2 + $0x189] sm:$0xff] %v2777_v6  ;;  %v651_v54 = vadd.f32 %v619_v31, %v3624_v55  ;;  %v2861_v31 = vld [vmem:[#allocation2 + $0x140] sm:$0xff]  ;;  %v2864_v40 = vadd.f32 %v3630_v44, %v941_v52  ;;  %v915_v35 = vmul.f32 %v2485_v14, %v2837_v45  ;;  %v1013_v39 = vmul.f32 %v2253_v11, %v2508_v0  ;;  %v2879_v44 = vld [vmem:[#allocation2 + $0x150] sm:$0xff] }
  0xd9   : > { %3613 = vst [vmem:[#allocation47_spill] sm:$0xff] %v2817_v24  ;;  %v943_v46 = vadd.f32 %v911_v8, %v844_v43  ;;  %v816_v24 = vmul.f32 %v2463_v5, %v2831_v34  ;;  %v3631_v8 = vld [vmem:[#allocation79_spill] sm:$0xff]  ;;  %v945_v63 = vadd.f32 %v913_v20, %v846_v27  ;;  %v3635_v3 = vld [vmem:[#allocation80_spill] sm:$0xff]  ;;  %v917_v27 = vmul.f32 %v2485_v14, %v2879_v44 }
  0xda   : > { %3616 = vst [vmem:[#allocation53_spill] sm:$0xff] %v2825_v56  ;;  %v2855_v56 = vadd.f32 %v3627_v30, %v649_v60  ;;  %v750_v43 = vadd.f32 %v3631_v8, %v652_v28  ;;  %v720_v30 = vmul.f32 %v2229_v2, %v2508_v0  ;;  %v2871_v60 = vld [vmem:[#allocation2 + $0x13a] sm:$0xff]  ;;  %v2874_v55 = vadd.f32 %v3633_v53, %v651_v54 }
  0xdb   : > { %3619 = vst [vmem:[#allocation59_spill] sm:$0xff] %v2831_v34  ;;  %v654_v52 = vadd.f32 %v622_v50, %v3635_v3  ;;  %v3637_v28 = vld [vmem:[#allocation78_spill] sm:$0xff]  ;;  %v818_v54 = vmul.f32 %v2463_v5, %v2871_v60  ;;  %v3640_v50 = vld [vmem:[#allocation23_spill] sm:$0xff] }
  0xdc   : > { %3620 = vst [vmem:[#allocation60_spill] sm:$0xff] %v2837_v45  ;;  %v2882_v8 = vadd.f32 %v3637_v28, %v943_v46  ;;  %v3639_v45 = vld [vmem:[#allocation77_spill] sm:$0xff]  ;;  %v558_v53 = vadd.f32 %v3640_v50, %v2724_v32  ;;  %v624_v46 = vmul.f32 %v2438_v61, %v2879_v44 }
  0xdd   : > { %3621 = vst [vmem:[#allocation55_spill] sm:$0xff] %v2839_v16  ;;  %v848_v16 = vadd.f32 %v816_v24, %v750_v43  ;;  %v653_v34 = vadd.f32 %v621_v22, %v3639_v45  ;;  %v752_v20 = vadd.f32 %v720_v30, %v654_v52  ;;  %v2893_v3 = vld [vmem:[#allocation2 + $0x152] sm:$0xff]  ;;  %v1015_v24 = vmul.f32 %v2253_v11, %v3587_v47 }
  0xde   : > { %3628 = vst [vmem:[#allocation65_spill] sm:$0xff] %v2855_v56  ;;  %v623_v56 = vmul.f32 %v2438_v61, %v2861_v31  ;;  %v721_v45 = vmul.f32 %v2229_v2, %v2511_v15  ;;  %v722_v22 = vmul.f32 %v2229_v2, %v3587_v47  ;;  %v2903_v43 = vld [vmem:[#allocation2 + $0x158] sm:$0xff]  ;;  %v2906_v30 = vadd.f32 %v2607_v13, %v945_v63 }
  0xdf   : > { %3629 = vst [vmem:[#allocation58_spill] sm:$0xff] %v2861_v31  ;;  %v947_v52 = vadd.f32 %v915_v35, %v848_v16  ;;  %v850_v28 = vadd.f32 %v818_v54, %v752_v20  ;;  %v3643_v31 = vld [vmem:[#allocation83_spill] sm:$0xff]  ;;  %v2912_v0 = vadd.f32 %v2611_v57, %v653_v34  ;;  %v656_v15 = vadd.f32 %v624_v46, %v558_v53  ;;  %v2932_v20 = vld [vmem:[#allocation2 + $0x16a] sm:$0xff] }
  0xe0   : > { %3632 = vst [vmem:[#allocation61_spill] sm:$0xff] %v2871_v60  ;;  %v655_v60 = vadd.f32 %v623_v56, %v3643_v31  ;;  %v559_v47 = vadd.f32 %v3640_v50, %v2735_v21  ;;  %v625_v16 = vmul.f32 %v2438_v61, %v2903_v43  ;;  %v560_v56 = vadd.f32 %v3640_v50, %v2766_v48  ;;  %v2924_v31 = vld [vmem:[#allocation2 + $0x170] sm:$0xff]  ;;  %v2934_v54 = vld [vmem:[#allocation2 + $0x180] sm:$0xff] }
  0xe1   : > { %3634 = vst [vmem:[#allocation66_spill] sm:$0xff] %v2874_v55  ;;  %v2909_v55 = vld [vmem:[#allocation2 + $0x168] sm:$0xff]  ;;  %v754_v57 = vadd.f32 %v722_v22, %v656_v15  ;;  %v1017_v34 = vmul.f32 %v2253_v11, %v2724_v32  ;;  %v724_v63 = vmul.f32 %v2229_v2, %v2724_v32  ;;  %v723_v15 = vmul.f32 %v2229_v2, %v2564_v51  ;;  %v2942_v22 = vld [vmem:[#allocation9 + $0x6] ss:$0 sm:$0xff] }
  0xe2   : > { %3636 = vst [vmem:[#allocation64_spill] sm:$0xff] %v2879_v44  ;;  %v820_v44 = vmul.f32 %v2463_v5, %v2893_v3  ;;  %v919_v13 = vmul.f32 %v2485_v14, %v2909_v55  ;;  %v626_v35 = vmul.f32 %v2438_v61, %v2909_v55  ;;  %v2938_v53 = vadd.f32 %v721_v45, %v655_v60  ;;  %v2958_v45 = vld [vmem:[#allocation2 + $0x172] sm:$0xff] }
  0xe3   : > { %3638 = vst [vmem:[#allocation71_spill] sm:$0xff] %v2882_v8  ;;  %v949_v8 = vadd.f32 %v917_v27, %v850_v28  ;;  %v2936_v27 = vadd.f32 %v1013_v39, %v947_v52  ;;  %v657_v46 = vadd.f32 %v625_v16, %v559_v47  ;;  %v627_v32 = vmul.f32 %v2438_v61, %v2924_v31  ;;  %v2960_v52 = vld [vmem:[#allocation2 + $0x188] sm:$0xff] }
  0xe4   : > { %3641 = vst [vmem:[#allocation72_spill] sm:$0xff] %v2893_v3  ;;  %v852_v28 = vadd.f32 %v820_v44, %v754_v57  ;;  %v444_v3 = vld [vmem:[%s2190_s27] sm:$0xff]  ;;  %v822_v47 = vmul.f32 %v2463_v5, %v2932_v20  ;;  %v921_v60 = vmul.f32 %v2485_v14, %v2934_v54  ;;  %v725_v44 = vmul.f32 %v2229_v2, %v2735_v21  ;;  %v2972_v21 = vld [vmem:[#allocation9 + $0x9] ss:$0 sm:$0xff] }
  0xe5   : > { %3642 = vst [vmem:[#allocation63_spill] sm:$0xff] %v2903_v43  ;;  %v658_v43 = vadd.f32 %v626_v35, %v560_v56  ;;  %v2950_v39 = vadd.f32 %v1015_v24, %v949_v8  ;;  %v1019_v8 = vmul.f32 %v2253_v11, %v2766_v48  ;;  %v761_v56 = vld [vmem:[#allocation2 + $0x22] sm:$0xff]  ;;  %v2966_v57 = vadd.f32 %v723_v15, %v657_v46  ;;  %v1056_v46 = vld [vmem:[#allocation2 + $0x3a] sm:$0xff] }
  0xe6   : > { %3644 = vst [vmem:[#allocation73_spill] sm:$0xff] %v2909_v55  ;;  %v561_v55 = vadd.f32 %v3640_v50, %v2777_v6  ;;  %v2962_v50 = vld [vmem:[#allocation9 + $0x8] ss:$0 sm:$0xff]  ;;  %v951_v61 = vadd.f32 %v919_v13, %v852_v28  ;;  %v2968_v35 = vmul.f32 0.0, %v444_v3  ;;  %v922_v13 = vmul.f32 %v2485_v14, %v2960_v52 }
  0xe7   : > { %3645 = vst [vmem:[#allocation70_spill] sm:$0xff] %v2912_v0  ;;  %v445_v0 = vld [vmem:[%s2190_s27 + $0x8] sm:$0xff]  ;;  %v756_v16 = vadd.f32 %v724_v63, %v658_v43  ;;  %v823_v43 = vmul.f32 %v2463_v5, %v2958_v45 }
  0xe8   : > { %3646 = vst [vmem:[#allocation75_spill] sm:$0xff] %v2924_v31  ;;  %v659_v24 = vadd.f32 %v627_v32, %v561_v55  ;;  %v451_v31 = vmul.f32 0.0, %v445_v0  ;;  %v2978_v32 = vld [vmem:[#allocation9 + $0xa] ss:$0 sm:$0xff]  ;;  %v1189_v0 = vmul.f32 %v2962_v50, %v2581_v42  ;;  %v2987_v15 = vadd.f32 %v1017_v34, %v951_v61 }
  0xe9   : > { %3647 = vst [vmem:[#allocation79_spill] sm:$0xff] %v2932_v20  ;;  %v854_v20 = vadd.f32 %v822_v47, %v756_v16  ;;  %v3652_v3 = vld [vmem:[#allocation26_spill] sm:$0xff]  ;;  %v1020_v47 = vmul.f32 %v2253_v11, %v2777_v6  ;;  %v1385_v34 = vmul.f32 %v2978_v32, %v2598_v7  ;;  %v1091_v6 = vmul.f32 %v2942_v22, %v2598_v7 }
  0xea   : > { %3648 = vst [vmem:[#allocation76_spill] sm:$0xff] %v2934_v54  ;;  %v3651_v54 = vld [vmem:[#allocation81_spill] sm:$0xff]  ;;  %v1287_v63 = vmul.f32 %v2972_v21, %v3652_v3 }
  0xeb   : > { %3649 = vst [vmem:[#allocation80_spill] sm:$0xff] %v2938_v53  ;;  %v1089_v2 = vmul.f32 %v2942_v22, %v3651_v54  ;;  %v757_v53 = vadd.f32 %v725_v44, %v659_v24  ;;  %v795_v54 = vmul.f32 %v2463_v5, %v761_v56  ;;  %v3653_v44 = vld [vmem:[#allocation82_spill] sm:$0xff]  ;;  %v3655_v56 = vld [vmem:[#allocation84_spill] sm:$0xff] }
  0xec   : > { %3650 = vst [vmem:[#allocation78_spill] sm:$0xff] %v2960_v52  ;;  %v894_v16 = vmul.f32 %v2485_v14, %v3653_v44  ;;  %v3657_v44 = vld [vmem:[#allocation27_spill] sm:$0xff] }
  0xed   : > { %524 = vst [vmem:[#allocation2 + $0x199] sm:$0xff] %v2968_v35  ;;  %v1121_v55 = vadd.f32 %v1089_v2, %v2675_v33  ;;  %v855_v28 = vadd.f32 %v823_v43, %v757_v53  ;;  %v953_v33 = vadd.f32 %v921_v60, %v854_v20  ;;  %v827_v42 = vadd.f32 %v795_v54, %v2620_v38  ;;  %v3654_v2 = vld [vmem:[#allocation25_spill] sm:$0xff] }
  0xee   : > { %525 = vst [vmem:[#allocation2 + $0x1a1] sm:$0xff] %v451_v31  ;;  %v992_v3 = vmul.f32 %v2253_v11, %v3654_v2  ;;  %v1090_v53 = vmul.f32 %v2942_v22, %v1056_v46  ;;  %v1190_v20 = vmul.f32 %v2962_v50, %v3655_v56  ;;  %v1191_v38 = vmul.f32 %v2962_v50, %v2600_v49  ;;  %v1352_v43 = vld [vmem:[#allocation2 + $0x52] sm:$0xff] }
  0xef   : > { %v1221_v24 = vadd.f32 %v1189_v0, %v1121_v55  ;;  %v954_v52 = vadd.f32 %v922_v13, %v855_v28  ;;  %v926_v61 = vadd.f32 %v894_v16, %v827_v42  ;;  %v1123_v13 = vadd.f32 %v1091_v6, %v2684_v9  ;;  %v3656_v55 = vld [vmem:[#allocation28_spill] sm:$0xff] }
  0xf0   : > { %v1289_v0 = vmul.f32 %v2972_v21, %v3656_v55  ;;  %v797_v54 = vmul.f32 %v2463_v5, %v1056_v46  ;;  %v3011_v7 = vadd.f32 %v1019_v8, %v953_v33  ;;  %v1288_v16 = vmul.f32 %v2972_v21, %v3657_v44  ;;  %v1354_v6 = vld [vmem:[#allocation2 + $0x6a] sm:$0xff] }
  0xf1   : > { %v1319_v31 = vadd.f32 %v1287_v63, %v1221_v24  ;;  %v3005_v60 = vadd.f32 %v1020_v47, %v954_v52  ;;  %v1024_v28 = vadd.f32 %v992_v3, %v926_v61  ;;  %v1223_v24 = vadd.f32 %v1191_v38, %v1123_v13 }
  0xf2   : > { %v829_v49 = vadd.f32 %v797_v54, %v2649_v10  ;;  %v896_v52 = vmul.f32 %v2485_v14, %v3655_v56  ;;  %v994_v9 = vmul.f32 %v2253_v11, %v3657_v44  ;;  %v1386_v46 = vmul.f32 %v2978_v32, %v1352_v43 }
  0xf3   : > { %v1417_v63 = vadd.f32 %v1385_v34, %v1319_v31  ;;  %v1122_v8 = vadd.f32 %v1090_v53, %v1024_v28  ;;  %v1387_v47 = vmul.f32 %v2978_v32, %v2627_v17  ;;  %v1093_v10 = vmul.f32 %v2942_v22, %v2627_v17  ;;  %v3658_v31 = vld [vmem:[#allocation30_spill] sm:$0xff] }
  0xf4   : > { %v1321_v33 = vadd.f32 %v1289_v0, %v1223_v24  ;;  %v928_v42 = vadd.f32 %v896_v52, %v829_v49  ;;  %v1092_v2 = vmul.f32 %v2942_v22, %v1352_v43  ;;  %v1193_v3 = vmul.f32 %v2962_v50, %v2629_v18 }
  0xf5   : > { %1449 = vst [vmem:[%s3022_s30 + $0x10] sm:$0xff] %v1417_v63  ;;  %v1222_v34 = vadd.f32 %v1190_v20, %v1122_v8  ;;  %v1125_v53 = vadd.f32 %v1093_v10, %v2701_v36  ;;  %v1291_v61 = vmul.f32 %v2972_v21, %v3658_v31  ;;  %v799_v56 = vmul.f32 %v2463_v5, %v1352_v43  ;;  %v3659_v20 = vld [vmem:[#allocation29_spill] sm:$0xff]  ;;  %v3660_v8 = vld [vmem:[#allocation32_spill] sm:$0xff] }
  0xf6   : > { %v1419_v38 = vadd.f32 %v1387_v47, %v1321_v33  ;;  %v1026_v13 = vadd.f32 %v994_v9, %v928_v42  ;;  %v1192_v17 = vmul.f32 %v2962_v50, %v2616_v26  ;;  %v898_v55 = vmul.f32 %v2485_v14, %v2616_v26  ;;  %v1356_v42 = vld [vmem:[#allocation2 + $0x82] sm:$0xff] }
  0xf7   : > { %v1320_v0 = vadd.f32 %v1288_v16, %v1222_v34  ;;  %v1225_v54 = vadd.f32 %v1193_v3, %v1125_v53  ;;  %v831_v18 = vadd.f32 %v799_v56, %v2657_v58  ;;  %v996_v36 = vmul.f32 %v2253_v11, %v3659_v20  ;;  %v3661_v34 = vld [vmem:[#allocation31_spill] sm:$0xff] }
  0xf8   : > { %1451 = vst [vmem:[%s3022_s30 + $0x20] sm:$0xff] %v1419_v38  ;;  %v1124_v63 = vadd.f32 %v1092_v2, %v1026_v13  ;;  %v1290_v43 = vmul.f32 %v2972_v21, %v3659_v20  ;;  %v1388_v28 = vmul.f32 %v2978_v32, %v1354_v6  ;;  %v1389_v44 = vmul.f32 %v2978_v32, %v2653_v29  ;;  %v3662_v20 = vld [vmem:[#allocation85_spill] sm:$0xff] }
  0xf9   : > { %v1418_v24 = vadd.f32 %v1386_v46, %v1320_v0  ;;  %v1323_v26 = vadd.f32 %v1291_v61, %v1225_v54  ;;  %v930_v16 = vadd.f32 %v898_v55, %v831_v18  ;;  %v1095_v58 = vmul.f32 %v2942_v22, %v2653_v29 }
  0xfa   : > { %v1224_v49 = vadd.f32 %v1192_v17, %v1124_v63  ;;  %v1094_v52 = vmul.f32 %v2942_v22, %v1354_v6  ;;  %v1195_v9 = vmul.f32 %v2962_v50, %v2643_v12  ;;  %v1293_v47 = vmul.f32 %v2972_v21, %v3660_v8  ;;  %v3663_v63 = vld [vmem:[#allocation34_spill] sm:$0xff] }
  0xfb   : > { %1450 = vst [vmem:[%s3022_s30 + $0x18] sm:$0xff] %v1418_v24  ;;  %v1421_v10 = vadd.f32 %v1389_v44, %v1323_v26  ;;  %v1028_v33 = vadd.f32 %v996_v36, %v930_v16  ;;  %v1127_v46 = vadd.f32 %v1095_v58, %v2738_v1  ;;  %v801_v2 = vmul.f32 %v2463_v5, %v1354_v6  ;;  %v3664_v26 = vld [vmem:[#allocation86_spill] sm:$0xff] }
  0xfc   : > { %v1322_v3 = vadd.f32 %v1290_v43, %v1224_v49  ;;  %v1194_v29 = vmul.f32 %v2962_v50, %v2645_v23  ;;  %v1292_v53 = vmul.f32 %v2972_v21, %v3661_v34  ;;  %v900_v12 = vmul.f32 %v2485_v14, %v2645_v23  ;;  %v3665_v49 = vld [vmem:[#allocation90_spill] sm:$0xff] }
  0xfd   : > { %1453 = vst [vmem:[%s3022_s30 + $0x30] sm:$0xff] %v1421_v10  ;;  %v1126_v31 = vadd.f32 %v1094_v52, %v1028_v33  ;;  %v1227_v61 = vadd.f32 %v1195_v9, %v1127_v46  ;;  %v833_v56 = vadd.f32 %v801_v2, %v2704_v41  ;;  %v998_v1 = vmul.f32 %v2253_v11, %v3661_v34  ;;  %v1358_v41 = vld [vmem:[#allocation2 + $0x9a] sm:$0xff]  ;;  %v3666_v9 = vld [vmem:[#allocation33_spill] sm:$0xff] }
  0xfe   : > { %v1420_v6 = vadd.f32 %v1388_v28, %v1322_v3  ;;  %v1390_v38 = vmul.f32 %v2978_v32, %v1356_v42  ;;  %v1391_v13 = vmul.f32 %v2978_v32, %v2680_v62  ;;  %v1097_v17 = vmul.f32 %v2942_v22, %v2680_v62  ;;  %v3667_v2 = vld [vmem:[#allocation89_spill] sm:$0xff] }
  0xff   : > { %v1226_v55 = vadd.f32 %v1194_v29, %v1126_v31  ;;  %v1325_v0 = vadd.f32 %v1293_v47, %v1227_v61  ;;  %v932_v23 = vadd.f32 %v900_v12, %v833_v56  ;;  %v1096_v54 = vmul.f32 %v2942_v22, %v1356_v42  ;;  %v3668_v31 = vld [vmem:[#allocation87_spill] sm:$0xff]  ;;  %v3669_v56 = vld [vmem:[#allocation37_spill] sm:$0xff] }
 0x100   : > { %1452 = vst [vmem:[%s3022_s30 + $0x28] sm:$0xff] %v1420_v6  ;;  %v1129_v18 = vadd.f32 %v1097_v17, %v2759_v59  ;;  %v1197_v36 = vmul.f32 %v2962_v50, %v3662_v20  ;;  %v1295_v43 = vmul.f32 %v2972_v21, %v3663_v63  ;;  %v803_v28 = vmul.f32 %v2463_v5, %v1356_v42 }
 0x101   : > { %v1324_v44 = vadd.f32 %v1292_v53, %v1226_v55  ;;  %v1423_v62 = vadd.f32 %v1391_v13, %v1325_v0  ;;  %v1030_v24 = vadd.f32 %v998_v1, %v932_v23  ;;  %v1196_v16 = vmul.f32 %v2962_v50, %v3664_v26  ;;  %v1360_v13 = vld [vmem:[#allocation2 + $0xb2] sm:$0xff]  ;;  %v3670_v23 = vld [vmem:[#allocation88_spill] sm:$0xff] }
 0x102   : > { %v1229_v58 = vadd.f32 %v1197_v36, %v1129_v18  ;;  %v835_v52 = vadd.f32 %v803_v28, %v3665_v49  ;;  %v902_v59 = vmul.f32 %v2485_v14, %v3664_v26  ;;  %v1000_v8 = vmul.f32 %v2253_v11, %v3666_v9  ;;  %v3671_v18 = vld [vmem:[#allocation35_spill] sm:$0xff]  ;;  %v3672_v28 = vld [vmem:[#allocation40_spill] sm:$0xff] }
 0x103   : > { %v1422_v47 = vadd.f32 %v1390_v38, %v1324_v44  ;;  %1455 = vst [vmem:[%s3022_s30 + $0x40] sm:$0xff] %v1423_v62  ;;  %v1128_v10 = vadd.f32 %v1096_v54, %v1030_v24  ;;  %v1294_v33 = vmul.f32 %v2972_v21, %v3666_v9  ;;  %v1392_v42 = vmul.f32 %v2978_v32, %v1358_v41  ;;  %v3673_v24 = vld [vmem:[#allocation91_spill] sm:$0xff]  ;;  %v1362_v9 = vld [vmem:[#allocation2 + $0xca] sm:$0xff] }
 0x104   : > { %v1327_v46 = vadd.f32 %v1295_v43, %v1229_v58  ;;  %v1393_v3 = vmul.f32 %v2978_v32, %v3667_v2  ;;  %v934_v29 = vadd.f32 %v902_v59, %v835_v52  ;;  %v1099_v34 = vmul.f32 %v2942_v22, %v3667_v2 }
 0x105   : > { %1454 = vst [vmem:[%s3022_s30 + $0x38] sm:$0xff] %v1422_v47  ;;  %v1228_v53 = vadd.f32 %v1196_v16, %v1128_v10  ;;  %v1098_v12 = vmul.f32 %v2942_v22, %v1358_v41  ;;  %v1199_v61 = vmul.f32 %v2962_v50, %v3668_v31  ;;  %v1297_v1 = vmul.f32 %v2972_v21, %v3669_v56  ;;  %v3678_v31 = vld [vmem:[#allocation49_spill] sm:$0xff] }
 0x106   : > { %v1425_v6 = vadd.f32 %v1393_v3, %v1327_v46  ;;  %v1032_v38 = vadd.f32 %v1000_v8, %v934_v29  ;;  %v1131_v17 = vadd.f32 %v1099_v34, %v2794_v4  ;;  %v805_v55 = vmul.f32 %v2463_v5, %v1358_v41  ;;  %v3674_v8 = vld [vmem:[#allocation53_spill] sm:$0xff]  ;;  %v3677_v34 = vld [vmem:[#allocation92_spill] sm:$0xff] }
 0x107   : > { %v1326_v0 = vadd.f32 %v1294_v33, %v1228_v53  ;;  %v1198_v54 = vmul.f32 %v2962_v50, %v3670_v23  ;;  %v1296_v20 = vmul.f32 %v2972_v21, %v3671_v18  ;;  %v904_v36 = vmul.f32 %v2485_v14, %v3670_v23  ;;  %v3676_v33 = vld [vmem:[#allocation44_spill] sm:$0xff] }
 0x108   : > { %1457 = vst [vmem:[%s3022_s30 + $0x50] sm:$0xff] %v1425_v6  ;;  %v1130_v63 = vadd.f32 %v1098_v12, %v1032_v38  ;;  %v1231_v43 = vadd.f32 %v1199_v61, %v1131_v17  ;;  %v837_v44 = vadd.f32 %v805_v55, %v3672_v28  ;;  %v1002_v4 = vmul.f32 %v2253_v11, %v3671_v18  ;;  %v3675_v11 = vld [vmem:[#allocation36_spill] sm:$0xff]  ;;  %v3679_v6 = vld [vmem:[#allocation39_spill] sm:$0xff]  ;;  %v3681_v28 = vld [vmem:[#allocation42_spill] sm:$0xff] }
 0x109   : > { %v1424_v41 = vadd.f32 %v1392_v42, %v1326_v0  ;;  %v1394_v62 = vmul.f32 %v2978_v32, %v1360_v13  ;;  %v1395_v26 = vmul.f32 %v2978_v32, %v3673_v24  ;;  %v1101_v16 = vmul.f32 %v2942_v22, %v3673_v24 }
 0x10a   : > { %v1230_v58 = vadd.f32 %v1198_v54, %v1130_v63  ;;  %v1329_v49 = vadd.f32 %v1297_v1, %v1231_v43  ;;  %v936_v52 = vadd.f32 %v904_v36, %v837_v44  ;;  %v1100_v59 = vmul.f32 %v2942_v22, %v1360_v13  ;;  %v3134_v1 = vld [vmem:[#allocation9 + $0x5] ss:$0 sm:$0xff] }
 0x10b   : > { %1456 = vst [vmem:[%s3022_s30 + $0x48] sm:$0xff] %v1424_v41  ;;  %v1133_v47 = vadd.f32 %v1101_v16, %v3674_v8  ;;  %v1201_v10 = vmul.f32 %v2962_v50, %v3675_v11  ;;  %v1299_v42 = vmul.f32 %v2972_v21, %v3676_v33  ;;  %v807_v46 = vmul.f32 %v2463_v5, %v1360_v13  ;;  %v3680_v54 = vld [vmem:[#allocation38_spill] sm:$0xff]  ;;  %v3684_v8 = vld [vmem:[#allocation45_spill] sm:$0xff] }
 0x10c   : > { %v1328_v2 = vadd.f32 %v1296_v20, %v1230_v58  ;;  %v1427_v3 = vadd.f32 %v1395_v26, %v1329_v49  ;;  %v1034_v29 = vadd.f32 %v1002_v4, %v936_v52  ;;  %v1200_v53 = vmul.f32 %v2962_v50, %v3677_v34  ;;  %v3682_v4 = vld [vmem:[#allocation50_spill] sm:$0xff]  ;;  %v1364_v26 = vld [vmem:[#allocation2 + $0xe2] sm:$0xff] }
 0x10d   : > { %v1233_v12 = vadd.f32 %v1201_v10, %v1133_v47  ;;  %v839_v61 = vadd.f32 %v807_v46, %v3678_v31  ;;  %v906_v56 = vmul.f32 %v2485_v14, %v3677_v34  ;;  %v1004_v38 = vmul.f32 %v3134_v1, %v3679_v6  ;;  %v3683_v52 = vld [vmem:[#allocation48_spill] sm:$0xff] }
 0x10e   : > { %v1426_v17 = vadd.f32 %v1394_v62, %v1328_v2  ;;  %1459 = vst [vmem:[%s3022_s30 + $0x60] sm:$0xff] %v1427_v3  ;;  %v1132_v13 = vadd.f32 %v1100_v59, %v1034_v29  ;;  %v1298_v55 = vmul.f32 %v2972_v21, %v3679_v6  ;;  %v1396_v0 = vmul.f32 %v2978_v32, %v1362_v9  ;;  %v3686_v3 = vld [vmem:[#allocation43_spill] sm:$0xff] }
 0x10f   : > { %v1331_v23 = vadd.f32 %v1299_v42, %v1233_v12  ;;  %v1397_v18 = vmul.f32 %v2978_v32, %v3680_v54  ;;  %v938_v20 = vadd.f32 %v906_v56, %v839_v61  ;;  %v1103_v36 = vmul.f32 %v2942_v22, %v3680_v54  ;;  %v3685_v42 = vld [vmem:[#allocation54_spill] sm:$0xff] }
 0x110   : > { %1458 = vst [vmem:[%s3022_s30 + $0x58] sm:$0xff] %v1426_v17  ;;  %v1232_v63 = vadd.f32 %v1200_v53, %v1132_v13  ;;  %v1102_v43 = vmul.f32 %v2942_v22, %v1362_v9  ;;  %v1203_v44 = vmul.f32 %v2962_v50, %v3681_v28  ;;  %v1301_v41 = vmul.f32 %v2972_v21, %v3682_v4  ;;  %v1366_v56 = vld [vmem:[#allocation2 + $0xfa] sm:$0xff]  ;;  %v3688_v13 = vld [vmem:[#allocation56_spill] sm:$0xff] }
 0x111   : > { %v1429_v62 = vadd.f32 %v1397_v18, %v1331_v23  ;;  %v1036_v24 = vadd.f32 %v1004_v38, %v938_v20  ;;  %v1135_v16 = vadd.f32 %v1103_v36, %v2849_v19  ;;  %v809_v58 = vmul.f32 %v2463_v5, %v1362_v9  ;;  %v3687_v38 = vld [vmem:[#allocation41_spill] sm:$0xff]  ;;  %v3689_v20 = vld [vmem:[#allocation52_spill] sm:$0xff]  ;;  %v3690_v28 = vld [vmem:[#allocation51_spill] sm:$0xff] }
 0x112   : > { %v1330_v49 = vadd.f32 %v1298_v55, %v1232_v63  ;;  %v1202_v59 = vmul.f32 %v2962_v50, %v3683_v52  ;;  %v1300_v47 = vmul.f32 %v2972_v21, %v3684_v8  ;;  %v908_v11 = vmul.f32 %v2485_v14, %v3683_v52 }
 0x113   : > { %1461 = vst [vmem:[%s3022_s30 + $0x70] sm:$0xff] %v1429_v62  ;;  %v1134_v10 = vadd.f32 %v1102_v43, %v1036_v24  ;;  %v1235_v33 = vadd.f32 %v1203_v44, %v1135_v16  ;;  %v841_v46 = vadd.f32 %v809_v58, %v3685_v42  ;;  %v1006_v19 = vmul.f32 %v3134_v1, %v3684_v8 }
 0x114   : > { %v1428_v9 = vadd.f32 %v1396_v0, %v1330_v49  ;;  %v1398_v2 = vmul.f32 %v2978_v32, %v1364_v26  ;;  %v1399_v29 = vmul.f32 %v2978_v32, %v3686_v3  ;;  %v1105_v34 = vmul.f32 %v2942_v22, %v3686_v3 }
 0x115   : > { %v1234_v53 = vadd.f32 %v1202_v59, %v1134_v10  ;;  %v1333_v12 = vadd.f32 %v1301_v41, %v1235_v33  ;;  %v940_v31 = vadd.f32 %v908_v11, %v841_v46  ;;  %v1104_v61 = vmul.f32 %v2942_v22, %v1364_v26  ;;  %v3692_v59 = vld [vmem:[#allocation62_spill] sm:$0xff]  ;;  %v3693_v33 = vld [vmem:[#allocation71_spill] sm:$0xff]  ;;  %v3199_v46 = vld [vmem:[#allocation9 + $0x2] ss:$0 sm:$0xff] }
 0x116   : > { %1460 = vst [vmem:[%s3022_s30 + $0x68] sm:$0xff] %v1428_v9  ;;  %v1137_v6 = vadd.f32 %v1105_v34, %v2864_v40  ;;  %v1205_v17 = vmul.f32 %v2962_v50, %v3687_v38  ;;  %v1303_v55 = vmul.f32 %v2972_v21, %v3688_v13  ;;  %v811_v0 = vmul.f32 %v2463_v5, %v1364_v26  ;;  %v3691_v26 = vld [vmem:[#allocation47_spill] sm:$0xff]  ;;  %v1368_v10 = vld [vmem:[#allocation2 + $0x112] sm:$0xff] }
 0x117   : > { %v1332_v23 = vadd.f32 %v1300_v47, %v1234_v53  ;;  %v1431_v54 = vadd.f32 %v1399_v29, %v1333_v12  ;;  %v1038_v18 = vadd.f32 %v1006_v19, %v940_v31  ;;  %v1204_v36 = vmul.f32 %v2962_v50, %v3689_v20  ;;  %v3695_v29 = vld [vmem:[#allocation57_spill] sm:$0xff]  ;;  %v3697_v13 = vld [vmem:[#allocation59_spill] sm:$0xff] }
 0x118   : > { %v1237_v63 = vadd.f32 %v1205_v17, %v1137_v6  ;;  %v843_v43 = vadd.f32 %v811_v0, %v2842_v37  ;;  %v910_v40 = vmul.f32 %v2485_v14, %v3689_v20  ;;  %v1008_v44 = vmul.f32 %v3134_v1, %v3690_v28 }
 0x119   : > { %v1430_v4 = vadd.f32 %v1398_v2, %v1332_v23  ;;  %1463 = vst [vmem:[%s3022_s30 + $0x80] sm:$0xff] %v1431_v54  ;;  %v1136_v41 = vadd.f32 %v1104_v61, %v1038_v18  ;;  %v1302_v5 = vmul.f32 %v2972_v21, %v3690_v28  ;;  %v1400_v62 = vmul.f32 %v2978_v32, %v1366_v56  ;;  %v3694_v2 = vld [vmem:[#allocation46_spill] sm:$0xff]  ;;  %v3696_v61 = vld [vmem:[#allocation65_spill] sm:$0xff]  ;;  %v3699_v28 = vld [vmem:[#allocation68_spill] sm:$0xff] }
 0x11a   : > { %v1335_v24 = vadd.f32 %v1303_v55, %v1237_v63  ;;  %v1401_v16 = vmul.f32 %v2978_v32, %v3691_v26  ;;  %v942_v58 = vadd.f32 %v910_v40, %v843_v43  ;;  %v1107_v37 = vmul.f32 %v2942_v22, %v3691_v26  ;;  %v3698_v43 = vld [vmem:[#allocation60_spill] sm:$0xff] }
 0x11b   : > { %1462 = vst [vmem:[%s3022_s30 + $0x78] sm:$0xff] %v1430_v4  ;;  %v1236_v14 = vadd.f32 %v1204_v36, %v1136_v41  ;;  %v1106_v49 = vmul.f32 %v2942_v22, %v1366_v56  ;;  %v1207_v52 = vmul.f32 %v2962_v50, %v2819_v25  ;;  %v1305_v8 = vmul.f32 %v2972_v21, %v3692_v59  ;;  %v3206_v25 = vld [vmem:[#allocation9 + $0x4] ss:$0 sm:$0xff]  ;;  %v1370_v36 = vld [vmem:[#allocation2 + $0x12a] sm:$0xff] }
 0x11c   : > { %v1433_v47 = vadd.f32 %v1401_v16, %v1335_v24  ;;  %v1040_v11 = vadd.f32 %v1008_v44, %v942_v58  ;;  %v1139_v42 = vadd.f32 %v1107_v37, %v3693_v33  ;;  %v813_v19 = vmul.f32 %v3199_v46, %v1366_v56  ;;  %v3700_v24 = vld [vmem:[#allocation55_spill] sm:$0xff]  ;;  %v978_v16 = vld [vmem:[#allocation2 + $0x129] sm:$0xff] }
 0x11d   : > { %v1334_v9 = vadd.f32 %v1302_v5, %v1236_v14  ;;  %v1206_v3 = vmul.f32 %v2962_v50, %v3694_v2  ;;  %v1304_v34 = vmul.f32 %v2972_v21, %v3695_v29  ;;  %v912_v53 = vmul.f32 %v3206_v25, %v3694_v2  ;;  %v3701_v58 = vld [vmem:[#allocation67_spill] sm:$0xff]  ;;  %v3702_v14 = vld [vmem:[#allocation66_spill] sm:$0xff] }
 0x11e   : > { %1465 = vst [vmem:[%s3022_s30 + $0x90] sm:$0xff] %v1433_v47  ;;  %v1138_v12 = vadd.f32 %v1106_v49, %v1040_v11  ;;  %v1239_v31 = vadd.f32 %v1207_v52, %v1139_v42  ;;  %v845_v6 = vadd.f32 %v813_v19, %v3696_v61  ;;  %v1010_v56 = vmul.f32 %v3134_v1, %v3695_v29  ;;  %v3703_v11 = vld [vmem:[#allocation61_spill] sm:$0xff] }
 0x11f   : > { %v1432_v38 = vadd.f32 %v1400_v62, %v1334_v9  ;;  %v1402_v17 = vmul.f32 %v2978_v32, %v1368_v10  ;;  %v1403_v55 = vmul.f32 %v2978_v32, %v3697_v13  ;;  %v1109_v0 = vmul.f32 %v2942_v22, %v3697_v13  ;;  %v1372_v9 = vld [vmem:[#allocation2 + $0x142] sm:$0xff] }
 0x120   : > { %v1238_v23 = vadd.f32 %v1206_v3, %v1138_v12  ;;  %v1337_v54 = vadd.f32 %v1305_v8, %v1239_v31  ;;  %v944_v18 = vadd.f32 %v912_v53, %v845_v6  ;;  %v1108_v20 = vmul.f32 %v2942_v22, %v1368_v10  ;;  %v3705_v12 = vld [vmem:[#allocation74_spill] sm:$0xff] }
 0x121   : > { %1464 = vst [vmem:[%s3022_s30 + $0x88] sm:$0xff] %v1432_v38  ;;  %v1141_v63 = vadd.f32 %v1109_v0, %v2906_v30  ;;  %v1209_v40 = vmul.f32 %v2962_v50, %v3698_v43  ;;  %v1307_v44 = vmul.f32 %v2972_v21, %v3699_v28  ;;  %v815_v4 = vmul.f32 %v3199_v46, %v1368_v10  ;;  %v3708_v43 = vld [vmem:[#allocation70_spill] sm:$0xff]  ;;  %v3709_v28 = vld [vmem:[#allocation72_spill] sm:$0xff] }
 0x122   : > { %v1336_v41 = vadd.f32 %v1304_v34, %v1238_v23  ;;  %v1435_v5 = vadd.f32 %v1403_v55, %v1337_v54  ;;  %v1042_v62 = vadd.f32 %v1010_v56, %v944_v18  ;;  %v1208_v26 = vmul.f32 %v2962_v50, %v3700_v24  ;;  %v3704_v34 = vld [vmem:[#allocation64_spill] sm:$0xff]  ;;  %v3706_v55 = vld [vmem:[#allocation58_spill] sm:$0xff]  ;;  %v3707_v23 = vld [vmem:[#allocation69_spill] sm:$0xff] }
 0x123   : > { %v1306_v37 = vmul.f32 %v2972_v21, %v3701_v58  ;;  %v1241_v30 = vadd.f32 %v1209_v40, %v1141_v63  ;;  %v847_v49 = vadd.f32 %v815_v4, %v3702_v14  ;;  %v914_v52 = vmul.f32 %v3206_v25, %v3700_v24  ;;  %v3711_v14 = vld [vmem:[#allocation93_spill] sm:$0xff] }
 0x124   : > { %v1434_v59 = vadd.f32 %v1402_v17, %v1336_v41  ;;  %1467 = vst [vmem:[%s3022_s30 + $0xa0] sm:$0xff] %v1435_v5  ;;  %v1140_v8 = vadd.f32 %v1108_v20, %v1042_v62  ;;  %v1404_v47 = vmul.f32 %v2978_v32, %v1370_v36  ;;  %v1405_v10 = vmul.f32 %v2978_v32, %v3703_v11  ;;  %v980_v17 = vld [vmem:[#allocation2 + $0x141] sm:$0xff] }
 0x125   : > { %v1339_v33 = vadd.f32 %v1307_v44, %v1241_v30  ;;  %v946_v42 = vadd.f32 %v914_v52, %v847_v49  ;;  %v1012_v19 = vmul.f32 %v3134_v1, %v978_v16  ;;  %v1111_v2 = vmul.f32 %v2942_v22, %v3703_v11  ;;  %v1374_v16 = vld [vmem:[#allocation2 + $0x15a] sm:$0xff] }
 0x126   : > { %1466 = vst [vmem:[%s3022_s30 + $0x98] sm:$0xff] %v1434_v59  ;;  %v1240_v3 = vadd.f32 %v1208_v26, %v1140_v8  ;;  %v1110_v29 = vmul.f32 %v2942_v22, %v1370_v36  ;;  %v1211_v53 = vmul.f32 %v2962_v50, %v3704_v34  ;;  %v1309_v31 = vmul.f32 %v2972_v21, %v3705_v12  ;;  %v3712_v11 = vld [vmem:[#allocation63_spill] sm:$0xff] }
 0x127   : > { %v1437_v61 = vadd.f32 %v1405_v10, %v1339_v33  ;;  %v1044_v6 = vadd.f32 %v1012_v19, %v946_v42  ;;  %v1143_v56 = vadd.f32 %v1111_v2, %v2936_v27  ;;  %v817_v38 = vmul.f32 %v3199_v46, %v1370_v36  ;;  %v982_v33 = vld [vmem:[#allocation2 + $0x159] sm:$0xff]  ;;  %v3713_v19 = vld [vmem:[#allocation80_spill] sm:$0xff] }
 0x128   : > { %v1338_v13 = vadd.f32 %v1306_v37, %v1240_v3  ;;  %v1210_v0 = vmul.f32 %v2962_v50, %v3706_v55  ;;  %v1308_v54 = vmul.f32 %v2972_v21, %v3707_v23  ;;  %v1406_v18 = vmul.f32 %v2978_v32, %v1372_v9  ;;  %v3710_v37 = vld [vmem:[#allocation73_spill] sm:$0xff] }
 0x129   : > { %1469 = vst [vmem:[%s3022_s30 + $0xb0] sm:$0xff] %v1437_v61  ;;  %v1142_v20 = vadd.f32 %v1110_v29, %v1044_v6  ;;  %v1243_v63 = vadd.f32 %v1211_v53, %v1143_v56  ;;  %v849_v40 = vadd.f32 %v817_v38, %v3708_v43  ;;  %v916_v27 = vmul.f32 %v3206_v25, %v3706_v55  ;;  %v3714_v53 = vld [vmem:[#allocation79_spill] sm:$0xff]  ;;  %v1278_v56 = vld [vmem:[#allocation2 + $0x171] sm:$0xff] }
 0x12a   : > { %v1436_v36 = vadd.f32 %v1404_v47, %v1338_v13  ;;  %v1407_v44 = vmul.f32 %v2978_v32, %v3709_v28  ;;  %v1014_v4 = vmul.f32 %v3134_v1, %v980_v17  ;;  %v1113_v41 = vmul.f32 %v2942_v22, %v3709_v28  ;;  %v3715_v13 = vld [vmem:[#allocation76_spill] sm:$0xff] }
 0x12b   : > { %v1242_v5 = vadd.f32 %v1210_v0, %v1142_v20  ;;  %v1341_v62 = vadd.f32 %v1309_v31, %v1243_v63  ;;  %v948_v24 = vadd.f32 %v916_v27, %v849_v40  ;;  %v1112_v26 = vmul.f32 %v2942_v22, %v1372_v9  ;;  %v1377_v20 = vld [vmem:[#allocation2 + $0x182] sm:$0xff] }
 0x12c   : > { %1468 = vst [vmem:[%s3022_s30 + $0xa8] sm:$0xff] %v1436_v36  ;;  %v1145_v58 = vadd.f32 %v1113_v41, %v2950_v39  ;;  %v1213_v30 = vmul.f32 %v2962_v50, %v3710_v37  ;;  %v1311_v49 = vmul.f32 %v2972_v21, %v3711_v14  ;;  %v819_v52 = vmul.f32 %v3199_v46, %v1372_v9  ;;  %v3716_v40 = vld [vmem:[#allocation75_spill] sm:$0xff] }
 0x12d   : > { %v1340_v59 = vadd.f32 %v1308_v54, %v1242_v5  ;;  %v1439_v8 = vadd.f32 %v1407_v44, %v1341_v62  ;;  %v1046_v47 = vadd.f32 %v1014_v4, %v948_v24  ;;  %v1212_v10 = vmul.f32 %v2962_v50, %v3712_v11  ;;  %v1182_v44 = vld [vmem:[#allocation2 + $0x198] sm:$0xff]  ;;  %v1378_v5 = vld [vmem:[#allocation2 + $0x18a] sm:$0xff] }
 0x12e   : > { %v1310_v42 = vmul.f32 %v2972_v21, %v2564_v51  ;;  %v1245_v39 = vadd.f32 %v1213_v30, %v1145_v58  ;;  %v851_v2 = vadd.f32 %v819_v52, %v3713_v19  ;;  %v918_v3 = vmul.f32 %v3206_v25, %v3712_v11  ;;  %v1183_v58 = vld [vmem:[#allocation2 + $0x1a0] sm:$0xff] }
 0x12f   : > { %v1438_v29 = vadd.f32 %v1406_v18, %v1340_v59  ;;  %1471 = vst [vmem:[%s3022_s30 + $0xc0] sm:$0xff] %v1439_v8  ;;  %v1144_v9 = vadd.f32 %v1112_v26, %v1046_v47  ;;  %v1408_v34 = vmul.f32 %v2978_v32, %v1374_v16  ;;  %v1409_v12 = vmul.f32 %v2978_v32, %v3714_v53  ;;  %v1282_v52 = vld [vmem:[#allocation2 + $0x1a1] sm:$0xff] }
 0x130   : > { %v1343_v31 = vadd.f32 %v1311_v49, %v1245_v39  ;;  %v950_v61 = vadd.f32 %v918_v3, %v851_v2  ;;  %v1016_v6 = vmul.f32 %v3134_v1, %v982_v33  ;;  %v1115_v51 = vmul.f32 %v2942_v22, %v3714_v53  ;;  %v562_v11 = vld [vmem:[#allocation2] sm:$0xff]  ;;  %v1280_v2 = vld [vmem:[#allocation2 + $0x189] sm:$0xff] }
 0x131   : > { %1470 = vst [vmem:[%s3022_s30 + $0xb8] sm:$0xff] %v1438_v29  ;;  %v1244_v38 = vadd.f32 %v1212_v10, %v1144_v9  ;;  %v1114_v17 = vmul.f32 %v2942_v22, %v1374_v16  ;;  %v1215_v55 = vmul.f32 %v2962_v50, %v3715_v13  ;;  %v1313_v0 = vmul.f32 %v2972_v21, %v2766_v48  ;;  %v1379_v39 = vld [vmem:[#allocation2 + $0x19a] sm:$0xff]  ;;  %v758_v13 = vld [vmem:[#allocation2 + $0x2] sm:$0xff] }
 0x132   : > { %v1441_v23 = vadd.f32 %v1409_v12, %v1343_v31  ;;  %v1048_v54 = vadd.f32 %v1016_v6, %v950_v61  ;;  %v1147_v18 = vadd.f32 %v1115_v51, %v2987_v15  ;;  %v821_v63 = vmul.f32 %v3199_v46, %v1374_v16  ;;  %v660_v9 = vld [vmem:[#allocation2 + $0x1] sm:$0xff]  ;;  %v1778_v31 = vld [vmem:[#allocation9] ss:$0 sm:$0xff]  ;;  %v1779_v6 = vld [vmem:[%s3390_s4] ss:$0 sm:$0xff] }
 0x133   : > { %v1342_v43 = vadd.f32 %v1310_v42, %v1244_v38  ;;  %v1214_v27 = vmul.f32 %v2962_v50, %v3716_v40  ;;  %v1312_v36 = vmul.f32 %v2972_v21, %v1278_v56  ;;  %v1410_v28 = vmul.f32 %v2978_v32, %v2958_v45  ;;  %v1380_v12 = vld [vmem:[#allocation2 + $0x1a2] sm:$0xff] }
 0x134   : > { %1473 = vst [vmem:[%s3022_s30 + $0xd0] sm:$0xff] %v1441_v23  ;;  %v1146_v48 = vadd.f32 %v1114_v17, %v1048_v54  ;;  %v1247_v4 = vadd.f32 %v1215_v55, %v1147_v18  ;;  %v853_v41 = vadd.f32 %v821_v63, %v2966_v57  ;;  %v920_v15 = vmul.f32 %v3206_v25, %v3716_v40  ;;  %v563_v55 = vld [vmem:[#allocation2 + $0x8] sm:$0xff] }
 0x135   : > { %v1440_v62 = vadd.f32 %v1408_v34, %v1342_v43  ;;  %v1411_v24 = vmul.f32 %v2978_v32, %v1377_v20  ;;  %v1018_v26 = vmul.f32 %v3134_v1, %v1278_v56  ;;  %v1117_v16 = vmul.f32 %v2942_v22, %v1377_v20  ;;  %v3717_v34 = vld [vmem:[#allocation78_spill] sm:$0xff]  ;;  %v1780_v56 = vld [vmem:[#allocation2 + $0x21] sm:$0xff]  ;;  %v1781_v20 = vld [vmem:[#allocation9 + $0x1] ss:$0 sm:$0xff] }
 0x136   : > { %v1246_v37 = vadd.f32 %v1214_v27, %v1146_v48  ;;  %v1345_v30 = vadd.f32 %v1313_v0, %v1247_v4  ;;  %v952_v14 = vadd.f32 %v920_v15, %v853_v41  ;;  %v1217_v49 = vmul.f32 %v2962_v50, %v1182_v44  ;;  %v3718_v54 = vld [vmem:[#allocation24_spill] sm:$0xff]  ;;  %v856_v43 = vld [vmem:[#allocation2 + $0x18] sm:$0xff] }
 0x137   : > { %1472 = vst [vmem:[%s3022_s30 + $0xc8] sm:$0xff] %v1440_v62  ;;  %v1116_v57 = vmul.f32 %v2942_v22, %v2958_v45  ;;  %v1149_v59 = vadd.f32 %v1117_v16, %v3011_v7  ;;  %v1315_v8 = vmul.f32 %v2972_v21, %v2968_v35  ;;  %v1118_v47 = vmul.f32 %v2942_v22, %v1378_v5  ;;  %v661_v44 = vld [vmem:[#allocation2 + $0x9] sm:$0xff] }
 0x138   : > { %v1344_v10 = vadd.f32 %v1312_v36, %v1246_v37  ;;  %v1443_v33 = vadd.f32 %v1411_v24, %v1345_v30  ;;  %v1050_v42 = vadd.f32 %v1018_v26, %v952_v14  ;;  %v1218_v19 = vmul.f32 %v2962_v50, %v1183_v58  ;;  %v955_v26 = vld [vmem:[#allocation2 + $0x19] sm:$0xff]  ;;  %v759_v16 = vld [vmem:[#allocation2 + $0xa] sm:$0xff] }
 0x139   : > { %v1249_v3 = vadd.f32 %v1217_v49, %v1149_v59  ;;  %v1150_v29 = vadd.f32 %v1118_v47, %v3005_v60  ;;  %v1316_v45 = vmul.f32 %v2972_v21, %v1282_v52  ;;  %v1216_v53 = vmul.f32 %v2962_v50, %v3717_v34  ;;  %v1053_v14 = vld [vmem:[#allocation2 + $0x1a] sm:$0xff]  ;;  %v1152_v47 = vld [vmem:[#allocation2 + $0x30] sm:$0xff] }
 0x13a   : > { %v1442_v7 = vadd.f32 %v1410_v28, %v1344_v10  ;;  %1475 = vst [vmem:[%s3022_s30 + $0xe0] sm:$0xff] %v1443_v33  ;;  %v1148_v35 = vadd.f32 %v1116_v57, %v1050_v42  ;;  %v596_v61 = vmul.f32 %v1778_v31, %v562_v11  ;;  %v531_v51 = vadd.f32 %v1780_v56, %v1779_v6  ;;  %v857_v49 = vld [vmem:[#allocation2 + $0x20] sm:$0xff] }
 0x13b   : > { %v1347_v60 = vadd.f32 %v1315_v8, %v1249_v3  ;;  %v1413_v38 = vmul.f32 %v2978_v32, %v1379_v39  ;;  %v1250_v17 = vadd.f32 %v1218_v19, %v1150_v29  ;;  %v1314_v23 = vmul.f32 %v2972_v21, %v1280_v2  ;;  %v956_v11 = vld [vmem:[#allocation2 + $0x21] sm:$0xff]  ;;  %v1251_v19 = vld [vmem:[#allocation2 + $0x31] sm:$0xff] }
 0x13c   : > { %1474 = vst [vmem:[%s3022_s30 + $0xd8] sm:$0xff] %v1442_v7  ;;  %v1248_v0 = vadd.f32 %v1216_v53, %v1148_v35  ;;  %v628_v18 = vadd.f32 %v596_v61, %v3718_v54  ;;  %v694_v63 = vmul.f32 %v1781_v20, %v660_v9  ;;  %v1412_v40 = vmul.f32 %v2978_v32, %v1378_v5  ;;  %v1054_v2 = vld [vmem:[#allocation2 + $0x22] sm:$0xff]  ;;  %v1349_v7 = vld [vmem:[#allocation2 + $0x32] sm:$0xff]  ;;  %v1350_v56 = vld [vmem:[#allocation2 + $0x3a] sm:$0xff] }
 0x13d   : > { %v1445_v27 = vadd.f32 %v1413_v38, %v1347_v60  ;;  %v1348_v36 = vadd.f32 %v1316_v45, %v1250_v17  ;;  %v1414_v28 = vmul.f32 %v2978_v32, %v1380_v12  ;;  %v792_v41 = vmul.f32 %v3199_v46, %v758_v13 }
 0x13e   : > { %v1346_v48 = vadd.f32 %v1314_v23, %v1248_v0  ;;  %v726_v4 = vadd.f32 %v694_v63, %v628_v18  ;;  %v597_v15 = vmul.f32 %v1778_v31, %v563_v55  ;;  %v891_v24 = vmul.f32 %v3206_v25, %v856_v43 }
 0x13f   : > { %1477 = vst [vmem:[%s3022_s30 + $0xf0] sm:$0xff] %v1445_v27  ;;  %v1446_v62 = vadd.f32 %v1414_v28, %v1348_v36  ;;  %v695_v30 = vmul.f32 %v1781_v20, %v661_v44  ;;  %v989_v57 = vmul.f32 %v3134_v1, %v955_v26  ;;  %v793_v8 = vmul.f32 %v3199_v46, %v759_v16  ;;  %v1153_v46 = vld [vmem:[#allocation2 + $0x38] sm:$0xff] }
 0x140   : > { %v1444_v58 = vadd.f32 %v1412_v40, %v1346_v48  ;;  %v824_v5 = vadd.f32 %v792_v41, %v726_v4  ;;  %v629_v37 = vadd.f32 %v597_v15, %v531_v51  ;;  %v1087_v33 = vmul.f32 %v2942_v22, %v1053_v14 }
 0x141   : > { %1478 = vst [vmem:[%s3022_s30 + $0xf8] sm:$0xff] %v1446_v62  ;;  %v892_v39 = vmul.f32 %v3206_v25, %v857_v49  ;;  %v1187_v29 = vmul.f32 %v2962_v50, %v1152_v47  ;;  %v990_v9 = vmul.f32 %v3134_v1, %v956_v11  ;;  %v1285_v34 = vmul.f32 %v2972_v21, %v1251_v19  ;;  %v1252_v25 = vld [vmem:[#allocation2 + $0x39] sm:$0xff] }
 0x142   : > { %1476 = vst [vmem:[%s3022_s30 + $0xe8] sm:$0xff] %v1444_v58  ;;  %v923_v52 = vadd.f32 %v891_v24, %v824_v5  ;;  %v727_v59 = vadd.f32 %v695_v30, %v629_v37  ;;  %v1088_v12 = vmul.f32 %v2942_v22, %v1054_v2  ;;  %v1383_v1 = vmul.f32 %v2978_v32, %v1349_v7 }
 0x143   : > { %v1188_v6 = vmul.f32 %v2962_v50, %v1153_v46  ;;  %v1286_v38 = vmul.f32 %v2972_v21, %v1252_v25  ;;  %v1384_v17 = vmul.f32 %v2978_v32, %v1350_v56 }
 0x144   : > { %v1021_v10 = vadd.f32 %v989_v57, %v923_v52  ;;  %v825_v42 = vadd.f32 %v793_v8, %v727_v59 }
 0x146   : > { %v1119_v3 = vadd.f32 %v1087_v33, %v1021_v10  ;;  %v924_v45 = vadd.f32 %v892_v39, %v825_v42 }
 0x148   : > { %v1219_v35 = vadd.f32 %v1187_v29, %v1119_v3  ;;  %v1022_v53 = vadd.f32 %v990_v9, %v924_v45 }
 0x14a   : > { %v1317_v31 = vadd.f32 %v1285_v34, %v1219_v35  ;;  %v1120_v61 = vadd.f32 %v1088_v12, %v1022_v53 }
 0x14c   : > { %v1415_v51 = vadd.f32 %v1383_v1, %v1317_v31  ;;  %v1220_v60 = vadd.f32 %v1188_v6, %v1120_v61 }
 0x14e   : > { %1447 = vst [vmem:[%s3022_s30] sm:$0xff] %v1415_v51  ;;  %v1318_v22 = vadd.f32 %v1286_v38, %v1220_v60 }
 0x150   : > { %v1416_v13 = vadd.f32 %v1384_v17, %v1318_v22 }
 0x152   : > { %1448 = vst [vmem:[%s3022_s30 + $0x8] sm:$0xff] %v1416_v13 }
 0x153   : > { %1929 = shalt.err (!%p1926_p13)
}
 0x154   : > { %s2000_s3 = smov 128   ;;  %s2001_s22 = smov 8  }
 0x155   : > { %1685 = dma.vmem_to_hbm [thread:$0]  (%p2124_p0), %s1496_s21, 4096, %s1498_s9, %s1480_s12, %s2000_s3, %s2000_s3, %s2001_s22  }
 0x156 PF: > { %s3719_s0 = sld [smem:[#allocation16_spill]]  ;;  %p1702_p4 = pnand %p1648_p3, %p2128_p2 }
 0x157   : > { %s3721_s23 = sld [smem:[#allocation19_spill]] }
 0x158   : > { %p1703_p5 = pneg %p1702_p4 }
 0x15c   : > { %s1512_s24 = sand.u32 1, %s3719_s0  }
 0x15d   : > { %s1513_s27 = scalar_lea.sflag [#allocation5], %s1512_s24 }
 0x15e   : > { %1967 = dma.done.wait (%p1703_p5), %s1513_s27, 4096  }
 0x15f   : > { %1969 = vsyncadd (%p1703_p5), %s1513_s27, 4294963200  ;;  %s25_s23 = sadd.s32 1, %s3721_s23   ;;  %s3722_s28 = sld [smem:[#allocation17_spill]] }
 0x160   : > { %p22_p1 = scmp.ge.s32.totalorder %s25_s23, 4   ;;  %s3723_s20 = sld [smem:[#allocation21_spill]] }
 0x161   : > { %s3724_s21 = sld [smem:[#allocation18_spill]]  ;;  %s3726_s18 = smov %s1976_s19 }
 0x162   : > { %s3725_s22 = sld [smem:[#allocation20_spill]]  ;;  %24 = sbr.rel (!%p22_p1) target bundleno = 13 (0xd), region = 118 }
 0x165   : > { %s3727_s19 = smov %s3722_s28 }
 0x167   :  { %1519 = vsyncpa [#allocation4], 1 }
 0x168   :  { %1521 = vsyncpa [#allocation4 + $0x1], 1 }
 0x169   :  { %1522 = vsyncpa [#allocation7], 1 }
 0x16a   :  { %1524 = vsyncpa [#allocation7 + $0x1], 1 }
 0x16b   :  { %1525 = vsyncpa [#allocation10], 1 }
 0x16c   :  { %1526 = vsyncpa [#allocation5], 1 }
 0x16d   :  { %1528 = vsyncpa [#allocation5 + $0x1], 1 }

</bundles_post_ra>
